<compile_context>
chip_gen: v6e
topology: v6e:2x2x1
jax: 0.10.0
libtpu: 0.0.40
codegen_flags: <defaults>
</compile_context>

<pallas_src>
import jax
import jax.numpy as jnp
from jax.experimental import pallas as pl
from jax.experimental.pallas import tpu as pltpu


def _gru_kernel(wx_ref, wh_ref, wrh_ref, b_ref, x_ref, h_ref, o_ref):
    """x_ref: (bb, C, TR, 128); h_ref: (C, TR, 128); o_ref: (bb, C_out, TR, 128).

    wx_ref  : SMEM f32[3*C_out*C]  rows [z|r|w], x-halves (z/r pre-scaled by 0.5)
    wh_ref  : SMEM f32[2*C_out*C]  rows [z|r],   h-halves (pre-scaled by 0.5)
    wrh_ref : SMEM f32[C_out*C]    w gate, (r*h)-half
    b_ref   : SMEM f32[3*C_out]    [0.5*bz | 0.5*br | bw]
    """
    BB, C, TR, _ = x_ref.shape
    C_out = o_ref.shape[1]

    def wx(row, i):
        return wx_ref[row * C + i]

    def wh(row, i):
        return wh_ref[row * C + i]

    def wrh(row, i):
        return wrh_ref[row * C + i]

    # Process 8 sublane rows at a time: each per-channel slab is a dense
    # (8, 128) vreg and the live set stays ~4*C vregs regardless of TR.
    for r0 in range(0, TR, 8):
        ch = min(8, TR - r0)
        rows = slice(r0, r0 + ch)

        # h has no batch axis: load its chunk once, reuse across the b loop.
        hs = [h_ref[i, rows, :].astype(jnp.float32) for i in range(C)]

        for b in range(BB):
            xs = [x_ref[b, i, rows, :].astype(jnp.float32) for i in range(C)]

            zs, rhs = [], []
            for k in range(C_out):
                # z / r pre-activations: scalar(SMEM) x vector FMAs.
                # Weights/bias already carry the 0.5 factor, so
                # sigmoid(u) == 0.5*tanh(pre) + 0.5 (overflow-safe, EUP).
                zp = xs[0] * wx(k, 0)
                rp = xs[0] * wx(C_out + k, 0)
                for i in range(1, C):
                    zp = zp + xs[i] * wx(k, i)
                    rp = rp + xs[i] * wx(C_out + k, i)
                for i in range(C):
                    zp = zp + hs[i] * wh(k, i)
                    rp = rp + hs[i] * wh(C_out + k, i)
                zp = zp + b_ref[k]
                rp = rp + b_ref[C_out + k]
                z_k = 0.5 * jnp.tanh(zp) + 0.5
                r_k = 0.5 * jnp.tanh(rp) + 0.5
                zs.append(z_k)
                rhs.append(r_k * hs[k])

            for k in range(C_out):
                wp = xs[0] * wx(2 * C_out + k, 0)
                for i in range(1, C):
                    wp = wp + xs[i] * wx(2 * C_out + k, i)
                for i in range(C):
                    wp = wp + rhs[i] * wrh(k, i)
                wp = wp + b_ref[2 * C_out + k]
                h_hat = jnp.tanh(wp)
                h_new = hs[k] + zs[k] * (h_hat - hs[k])   # (1-z)*h + z*h_hat
                o_ref[b, k, rows, :] = h_new.astype(o_ref.dtype)


def _row_tile(r, cap=256):
    """Rows (of 128 lanes) per grid block: a divisor of r, multiple of 8 if possible."""
    if r <= cap:
        return r
    tr = cap - cap % 8
    while tr >= 8:
        if r % tr == 0:
            return tr
        tr -= 8
    return r


@jax.jit
def graph_gru_forward(graph, h_hid, params):
    """graph: (B, C, H, W); h_hid: (1, H, W, C) (module layout); -> (B, C, H, W)."""
    B, C, H, W = graph.shape
    C_out = params["wz"].shape[0]
    assert C_out == C, "Graph_GRU requires n_GMB == n_feat for (1-z)*h + z*h_hat"
    S = H * W
    S_pad = -(-S // 128) * 128            # pad to lane-dense width
    R = S_pad // 128

    # Channel-first, lane-dense layout: (B, C, R, 128) / (C, R, 128).
    x = graph.reshape(B, C, S)
    h = jnp.transpose(h_hid[0], (2, 0, 1)).reshape(C, S)    # tiny one-off (C*S)
    if S_pad != S:
        x = jnp.pad(x, ((0, 0), (0, 0), (0, S_pad - S)))
        h = jnp.pad(h, ((0, 0), (0, S_pad - S)))
    x = x.reshape(B, C, R, 128)
    h = h.reshape(C, R, 128)

    # Fuse the three Linear(2C -> C_out) layers (h-half = first C columns,
    # x-half = last C), pre-scale the z/r parts by 0.5 for the tanh-sigmoid,
    # flatten to 1D f32 for SMEM scalar access.
    wz, wr, ww = params["wz"], params["wr"], params["ww"]
    w_x = jnp.concatenate([0.5 * wz[:, C:], 0.5 * wr[:, C:], ww[:, C:]],
                          axis=0).reshape(-1).astype(jnp.float32)
    w_h = jnp.concatenate([0.5 * wz[:, :C], 0.5 * wr[:, :C]],
                          axis=0).reshape(-1).astype(jnp.float32)
    w_rh = ww[:, :C].reshape(-1).astype(jnp.float32)
    bias = jnp.concatenate([0.5 * params["bz"], 0.5 * params["br"],
                            params["bw"]]).astype(jnp.float32)

    tr = _row_tile(R)
    # Fold the whole batch into one block when it stays tiny (grid-step-
    # overhead-bound regime): one step loads h and the weights once for all B.
    bb = B if B * C * tr * 128 * 4 <= (1 << 20) else 1
    grid = (R // tr, B // bb)              # batch innermost -> h block resident

    smem = pl.BlockSpec(memory_space=pltpu.MemorySpace.SMEM)
    x_spec = pl.BlockSpec((bb, C, tr, 128), lambda r_i, b_i: (b_i, 0, r_i, 0))
    h_spec = pl.BlockSpec((C, tr, 128), lambda r_i, b_i: (0, r_i, 0))
    o_spec = pl.BlockSpec((bb, C_out, tr, 128), lambda r_i, b_i: (b_i, 0, r_i, 0))

    # TODO(synk): on v6e/v7x with bf16 inputs, keep the elementwise/tanh math
    # in bf16 (f32 only for the C-deep accumulation) for 2x vreg density.
    out = pl.pallas_call(
        _gru_kernel,
        out_shape=jax.ShapeDtypeStruct((B, C_out, R, 128), graph.dtype),
        grid_spec=pltpu.PrefetchScalarGridSpec(
            num_scalar_prefetch=0,
            grid=grid,
            in_specs=[smem, smem, smem, smem, x_spec, h_spec],
            out_specs=o_spec,
        ),
        compiler_params=pltpu.CompilerParams(
            dimension_semantics=("parallel", "arbitrary")),
    )(w_x, w_h, w_rh, bias, x, h)

    out = out.reshape(B, C_out, S_pad)
    if S_pad != S:
        out = out[:, :, :S]
    return out.reshape(B, C_out, H, W)


def _reference(graph, h_hid, params):
    """Pure-JAX reference mirroring the PyTorch forward (eval mode)."""
    B, C, H, W = graph.shape
    x = jnp.transpose(graph, (0, 2, 3, 1))                    # (B,H,W,C)
    h = jnp.tile(h_hid, (B, 1, 1, 1))                         # (B,H,W,C)
    cat_hx = jnp.concatenate((h, x), axis=-1)
    z = jax.nn.sigmoid(cat_hx @ params["wz"].T + params["bz"])
    r = jax.nn.sigmoid(cat_hx @ params["wr"].T + params["br"])
    cat_rhx = jnp.concatenate((r * h, x), axis=-1)
    h_hat = jnp.tanh(cat_rhx @ params["ww"].T + params["bw"])
    h_new = (1.0 - z) * h + z * h_hat
    return jnp.transpose(h_new, (0, 3, 1, 2))


if __name__ == "__main__":
    # Small config consistent with the module: n_GMB == n_feat so the GRU
    # broadcast (1-z)*h is well-formed (as the PyTorch code implicitly requires).
    B, n_feat, H, W = 2, 4, 16, 16
    n_GMB = n_feat
    c_in = 2 * n_feat

    key = jax.random.PRNGKey(0)
    k = jax.random.split(key, 9)
    bound = 1.0 / jnp.sqrt(c_in)  # PyTorch nn.Linear default init range

    params = {
        "wz": jax.random.uniform(k[0], (n_GMB, c_in), jnp.float32, -bound, bound),
        "bz": jax.random.uniform(k[1], (n_GMB,), jnp.float32, -bound, bound),
        "wr": jax.random.uniform(k[2], (n_GMB, c_in), jnp.float32, -bound, bound),
        "br": jax.random.uniform(k[3], (n_GMB,), jnp.float32, -bound, bound),
        "ww": jax.random.uniform(k[4], (n_GMB, c_in), jnp.float32, -bound, bound),
        "bw": jax.random.uniform(k[5], (n_GMB,), jnp.float32, -bound, bound),
    }

    # init_graph (n_feat, H, W) -> h_hid (1, H, W, n_feat), as the module stores it
    init_graph = jax.random.normal(k[6], (n_feat, H, W), jnp.float32)
    h_hid = jnp.transpose(init_graph[None], (0, 2, 3, 1))

    graph = jax.random.normal(k[7], (B, n_feat, H, W), jnp.float32)

    out = graph_gru_forward(graph, h_hid, params)
    out = jax.block_until_ready(out)

    ref = _reference(graph, h_hid, params)
    assert out.shape == (B, n_GMB, H, W)
    assert jnp.allclose(out, ref, atol=1e-5, rtol=1e-5)
    print("KERNEL_OK")
</pallas_src>

<mosaic_0001>
module attributes {stable_mosaic.version = 11 : i64} {
  func.func @_gru_kernel(%arg0: i32, %arg1: i32, %arg2: memref<48xf32, #tpu.memory_space<smem>>, %arg3: memref<32xf32, #tpu.memory_space<smem>>, %arg4: memref<16xf32, #tpu.memory_space<smem>>, %arg5: memref<12xf32, #tpu.memory_space<smem>>, %arg6: memref<2x4x2x128xf32, #tpu.memory_space<vmem>>, %arg7: memref<4x2x128xf32, #tpu.memory_space<vmem>>, %arg8: memref<2x4x2x128xf32, #tpu.memory_space<vmem>>) attributes {dimension_semantics = [#tpu.dimension_semantics<parallel>, #tpu.dimension_semantics<arbitrary>], iteration_bounds = array<i64: 1, 1>, scalar_prefetch = 0 : i64, scratch_operands = 0 : i64, tpu.core_type = #tpu.core_type<tc>, window_params = [{transform_indices = @transform_0, window_bounds = array<i64: 48>}, {transform_indices = @transform_1, window_bounds = array<i64: 32>}, {transform_indices = @transform_2, window_bounds = array<i64: 16>}, {transform_indices = @transform_3, window_bounds = array<i64: 12>}, {transform_indices = @transform_4, window_bounds = array<i64: 2, 4, 2, 128>}, {transform_indices = @transform_5, window_bounds = array<i64: 4, 2, 128>}, {transform_indices = @transform_6, window_bounds = array<i64: 2, 4, 2, 128>}]} {
    %c0 = arith.constant 0 : index
    %c0_0 = arith.constant 0 : index
    %c0_1 = arith.constant 0 : index
    %0 = vector.load %arg7[%c0, %c0_0, %c0_1] : memref<4x2x128xf32, #tpu.memory_space<vmem>>, vector<1x2x128xf32>
    %1 = vector.shape_cast %0 : vector<1x2x128xf32> to vector<2x128xf32>
    %c1 = arith.constant 1 : index
    %c0_2 = arith.constant 0 : index
    %c0_3 = arith.constant 0 : index
    %2 = vector.load %arg7[%c1, %c0_2, %c0_3] : memref<4x2x128xf32, #tpu.memory_space<vmem>>, vector<1x2x128xf32>
    %3 = vector.shape_cast %2 : vector<1x2x128xf32> to vector<2x128xf32>
    %c2 = arith.constant 2 : index
    %c0_4 = arith.constant 0 : index
    %c0_5 = arith.constant 0 : index
    %4 = vector.load %arg7[%c2, %c0_4, %c0_5] : memref<4x2x128xf32, #tpu.memory_space<vmem>>, vector<1x2x128xf32>
    %5 = vector.shape_cast %4 : vector<1x2x128xf32> to vector<2x128xf32>
    %c3 = arith.constant 3 : index
    %c0_6 = arith.constant 0 : index
    %c0_7 = arith.constant 0 : index
    %6 = vector.load %arg7[%c3, %c0_6, %c0_7] : memref<4x2x128xf32, #tpu.memory_space<vmem>>, vector<1x2x128xf32>
    %7 = vector.shape_cast %6 : vector<1x2x128xf32> to vector<2x128xf32>
    %c0_8 = arith.constant 0 : index
    %c0_9 = arith.constant 0 : index
    %c0_10 = arith.constant 0 : index
    %c0_11 = arith.constant 0 : index
    %8 = vector.load %arg6[%c0_8, %c0_9, %c0_10, %c0_11] : memref<2x4x2x128xf32, #tpu.memory_space<vmem>>, vector<1x1x2x128xf32>
    %9 = vector.shape_cast %8 : vector<1x1x2x128xf32> to vector<2x128xf32>
    %c0_12 = arith.constant 0 : index
    %c1_13 = arith.constant 1 : index
    %c0_14 = arith.constant 0 : index
    %c0_15 = arith.constant 0 : index
    %10 = vector.load %arg6[%c0_12, %c1_13, %c0_14, %c0_15] : memref<2x4x2x128xf32, #tpu.memory_space<vmem>>, vector<1x1x2x128xf32>
    %11 = vector.shape_cast %10 : vector<1x1x2x128xf32> to vector<2x128xf32>
    %c0_16 = arith.constant 0 : index
    %c2_17 = arith.constant 2 : index
    %c0_18 = arith.constant 0 : index
    %c0_19 = arith.constant 0 : index
    %12 = vector.load %arg6[%c0_16, %c2_17, %c0_18, %c0_19] : memref<2x4x2x128xf32, #tpu.memory_space<vmem>>, vector<1x1x2x128xf32>
    %13 = vector.shape_cast %12 : vector<1x1x2x128xf32> to vector<2x128xf32>
    %c0_20 = arith.constant 0 : index
    %c3_21 = arith.constant 3 : index
    %c0_22 = arith.constant 0 : index
    %c0_23 = arith.constant 0 : index
    %14 = vector.load %arg6[%c0_20, %c3_21, %c0_22, %c0_23] : memref<2x4x2x128xf32, #tpu.memory_space<vmem>>, vector<1x1x2x128xf32>
    %15 = vector.shape_cast %14 : vector<1x1x2x128xf32> to vector<2x128xf32>
    %c0_24 = arith.constant 0 : index
    %16 = memref.load %arg2[%c0_24] : memref<48xf32, #tpu.memory_space<smem>>
    %17 = vector.broadcast %16 : f32 to vector<2x128xf32>
    %18 = arith.mulf %9, %17 : vector<2x128xf32>
    %c16 = arith.constant 16 : index
    %19 = memref.load %arg2[%c16] : memref<48xf32, #tpu.memory_space<smem>>
    %20 = vector.broadcast %19 : f32 to vector<2x128xf32>
    %21 = arith.mulf %9, %20 : vector<2x128xf32>
    %c1_25 = arith.constant 1 : index
    %22 = memref.load %arg2[%c1_25] : memref<48xf32, #tpu.memory_space<smem>>
    %23 = vector.broadcast %22 : f32 to vector<2x128xf32>
    %24 = arith.mulf %11, %23 : vector<2x128xf32>
    %25 = arith.addf %18, %24 : vector<2x128xf32>
    %c17 = arith.constant 17 : index
    %26 = memref.load %arg2[%c17] : memref<48xf32, #tpu.memory_space<smem>>
    %27 = vector.broadcast %26 : f32 to vector<2x128xf32>
    %28 = arith.mulf %11, %27 : vector<2x128xf32>
    %29 = arith.addf %21, %28 : vector<2x128xf32>
    %c2_26 = arith.constant 2 : index
    %30 = memref.load %arg2[%c2_26] : memref<48xf32, #tpu.memory_space<smem>>
    %31 = vector.broadcast %30 : f32 to vector<2x128xf32>
    %32 = arith.mulf %13, %31 : vector<2x128xf32>
    %33 = arith.addf %25, %32 : vector<2x128xf32>
    %c18 = arith.constant 18 : index
    %34 = memref.load %arg2[%c18] : memref<48xf32, #tpu.memory_space<smem>>
    %35 = vector.broadcast %34 : f32 to vector<2x128xf32>
    %36 = arith.mulf %13, %35 : vector<2x128xf32>
    %37 = arith.addf %29, %36 : vector<2x128xf32>
    %c3_27 = arith.constant 3 : index
    %38 = memref.load %arg2[%c3_27] : memref<48xf32, #tpu.memory_space<smem>>
    %39 = vector.broadcast %38 : f32 to vector<2x128xf32>
    %40 = arith.mulf %15, %39 : vector<2x128xf32>
    %41 = arith.addf %33, %40 : vector<2x128xf32>
    %c19 = arith.constant 19 : index
    %42 = memref.load %arg2[%c19] : memref<48xf32, #tpu.memory_space<smem>>
    %43 = vector.broadcast %42 : f32 to vector<2x128xf32>
    %44 = arith.mulf %15, %43 : vector<2x128xf32>
    %45 = arith.addf %37, %44 : vector<2x128xf32>
    %c0_28 = arith.constant 0 : index
    %46 = memref.load %arg3[%c0_28] : memref<32xf32, #tpu.memory_space<smem>>
    %47 = vector.broadcast %46 : f32 to vector<2x128xf32>
    %48 = arith.mulf %1, %47 : vector<2x128xf32>
    %49 = arith.addf %41, %48 : vector<2x128xf32>
    %c16_29 = arith.constant 16 : index
    %50 = memref.load %arg3[%c16_29] : memref<32xf32, #tpu.memory_space<smem>>
    %51 = vector.broadcast %50 : f32 to vector<2x128xf32>
    %52 = arith.mulf %1, %51 : vector<2x128xf32>
    %53 = arith.addf %45, %52 : vector<2x128xf32>
    %c1_30 = arith.constant 1 : index
    %54 = memref.load %arg3[%c1_30] : memref<32xf32, #tpu.memory_space<smem>>
    %55 = vector.broadcast %54 : f32 to vector<2x128xf32>
    %56 = arith.mulf %3, %55 : vector<2x128xf32>
    %57 = arith.addf %49, %56 : vector<2x128xf32>
    %c17_31 = arith.constant 17 : index
    %58 = memref.load %arg3[%c17_31] : memref<32xf32, #tpu.memory_space<smem>>
    %59 = vector.broadcast %58 : f32 to vector<2x128xf32>
    %60 = arith.mulf %3, %59 : vector<2x128xf32>
    %61 = arith.addf %53, %60 : vector<2x128xf32>
    %c2_32 = arith.constant 2 : index
    %62 = memref.load %arg3[%c2_32] : memref<32xf32, #tpu.memory_space<smem>>
    %63 = vector.broadcast %62 : f32 to vector<2x128xf32>
    %64 = arith.mulf %5, %63 : vector<2x128xf32>
    %65 = arith.addf %57, %64 : vector<2x128xf32>
    %c18_33 = arith.constant 18 : index
    %66 = memref.load %arg3[%c18_33] : memref<32xf32, #tpu.memory_space<smem>>
    %67 = vector.broadcast %66 : f32 to vector<2x128xf32>
    %68 = arith.mulf %5, %67 : vector<2x128xf32>
    %69 = arith.addf %61, %68 : vector<2x128xf32>
    %c3_34 = arith.constant 3 : index
    %70 = memref.load %arg3[%c3_34] : memref<32xf32, #tpu.memory_space<smem>>
    %71 = vector.broadcast %70 : f32 to vector<2x128xf32>
    %72 = arith.mulf %7, %71 : vector<2x128xf32>
    %73 = arith.addf %65, %72 : vector<2x128xf32>
    %c19_35 = arith.constant 19 : index
    %74 = memref.load %arg3[%c19_35] : memref<32xf32, #tpu.memory_space<smem>>
    %75 = vector.broadcast %74 : f32 to vector<2x128xf32>
    %76 = arith.mulf %7, %75 : vector<2x128xf32>
    %77 = arith.addf %69, %76 : vector<2x128xf32>
    %c0_36 = arith.constant 0 : index
    %78 = memref.load %arg5[%c0_36] : memref<12xf32, #tpu.memory_space<smem>>
    %79 = vector.broadcast %78 : f32 to vector<2x128xf32>
    %80 = arith.addf %73, %79 : vector<2x128xf32>
    %c4 = arith.constant 4 : index
    %81 = memref.load %arg5[%c4] : memref<12xf32, #tpu.memory_space<smem>>
    %82 = vector.broadcast %81 : f32 to vector<2x128xf32>
    %83 = arith.addf %77, %82 : vector<2x128xf32>
    %84 = math.tanh %80 : vector<2x128xf32>
    %cst = arith.constant 5.000000e-01 : f32
    %85 = vector.broadcast %cst : f32 to vector<2x128xf32>
    %86 = arith.mulf %85, %84 : vector<2x128xf32>
    %cst_37 = arith.constant 5.000000e-01 : f32
    %87 = vector.broadcast %cst_37 : f32 to vector<2x128xf32>
    %88 = arith.addf %86, %87 : vector<2x128xf32>
    %89 = math.tanh %83 : vector<2x128xf32>
    %cst_38 = arith.constant 5.000000e-01 : f32
    %90 = vector.broadcast %cst_38 : f32 to vector<2x128xf32>
    %91 = arith.mulf %90, %89 : vector<2x128xf32>
    %cst_39 = arith.constant 5.000000e-01 : f32
    %92 = vector.broadcast %cst_39 : f32 to vector<2x128xf32>
    %93 = arith.addf %91, %92 : vector<2x128xf32>
    %94 = arith.mulf %93, %1 : vector<2x128xf32>
    %c4_40 = arith.constant 4 : index
    %95 = memref.load %arg2[%c4_40] : memref<48xf32, #tpu.memory_space<smem>>
    %96 = vector.broadcast %95 : f32 to vector<2x128xf32>
    %97 = arith.mulf %9, %96 : vector<2x128xf32>
    %c20 = arith.constant 20 : index
    %98 = memref.load %arg2[%c20] : memref<48xf32, #tpu.memory_space<smem>>
    %99 = vector.broadcast %98 : f32 to vector<2x128xf32>
    %100 = arith.mulf %9, %99 : vector<2x128xf32>
    %c5 = arith.constant 5 : index
    %101 = memref.load %arg2[%c5] : memref<48xf32, #tpu.memory_space<smem>>
    %102 = vector.broadcast %101 : f32 to vector<2x128xf32>
    %103 = arith.mulf %11, %102 : vector<2x128xf32>
    %104 = arith.addf %97, %103 : vector<2x128xf32>
    %c21 = arith.constant 21 : index
    %105 = memref.load %arg2[%c21] : memref<48xf32, #tpu.memory_space<smem>>
    %106 = vector.broadcast %105 : f32 to vector<2x128xf32>
    %107 = arith.mulf %11, %106 : vector<2x128xf32>
    %108 = arith.addf %100, %107 : vector<2x128xf32>
    %c6 = arith.constant 6 : index
    %109 = memref.load %arg2[%c6] : memref<48xf32, #tpu.memory_space<smem>>
    %110 = vector.broadcast %109 : f32 to vector<2x128xf32>
    %111 = arith.mulf %13, %110 : vector<2x128xf32>
    %112 = arith.addf %104, %111 : vector<2x128xf32>
    %c22 = arith.constant 22 : index
    %113 = memref.load %arg2[%c22] : memref<48xf32, #tpu.memory_space<smem>>
    %114 = vector.broadcast %113 : f32 to vector<2x128xf32>
    %115 = arith.mulf %13, %114 : vector<2x128xf32>
    %116 = arith.addf %108, %115 : vector<2x128xf32>
    %c7 = arith.constant 7 : index
    %117 = memref.load %arg2[%c7] : memref<48xf32, #tpu.memory_space<smem>>
    %118 = vector.broadcast %117 : f32 to vector<2x128xf32>
    %119 = arith.mulf %15, %118 : vector<2x128xf32>
    %120 = arith.addf %112, %119 : vector<2x128xf32>
    %c23 = arith.constant 23 : index
    %121 = memref.load %arg2[%c23] : memref<48xf32, #tpu.memory_space<smem>>
    %122 = vector.broadcast %121 : f32 to vector<2x128xf32>
    %123 = arith.mulf %15, %122 : vector<2x128xf32>
    %124 = arith.addf %116, %123 : vector<2x128xf32>
    %c4_41 = arith.constant 4 : index
    %125 = memref.load %arg3[%c4_41] : memref<32xf32, #tpu.memory_space<smem>>
    %126 = vector.broadcast %125 : f32 to vector<2x128xf32>
    %127 = arith.mulf %1, %126 : vector<2x128xf32>
    %128 = arith.addf %120, %127 : vector<2x128xf32>
    %c20_42 = arith.constant 20 : index
    %129 = memref.load %arg3[%c20_42] : memref<32xf32, #tpu.memory_space<smem>>
    %130 = vector.broadcast %129 : f32 to vector<2x128xf32>
    %131 = arith.mulf %1, %130 : vector<2x128xf32>
    %132 = arith.addf %124, %131 : vector<2x128xf32>
    %c5_43 = arith.constant 5 : index
    %133 = memref.load %arg3[%c5_43] : memref<32xf32, #tpu.memory_space<smem>>
    %134 = vector.broadcast %133 : f32 to vector<2x128xf32>
    %135 = arith.mulf %3, %134 : vector<2x128xf32>
    %136 = arith.addf %128, %135 : vector<2x128xf32>
    %c21_44 = arith.constant 21 : index
    %137 = memref.load %arg3[%c21_44] : memref<32xf32, #tpu.memory_space<smem>>
    %138 = vector.broadcast %137 : f32 to vector<2x128xf32>
    %139 = arith.mulf %3, %138 : vector<2x128xf32>
    %140 = arith.addf %132, %139 : vector<2x128xf32>
    %c6_45 = arith.constant 6 : index
    %141 = memref.load %arg3[%c6_45] : memref<32xf32, #tpu.memory_space<smem>>
    %142 = vector.broadcast %141 : f32 to vector<2x128xf32>
    %143 = arith.mulf %5, %142 : vector<2x128xf32>
    %144 = arith.addf %136, %143 : vector<2x128xf32>
    %c22_46 = arith.constant 22 : index
    %145 = memref.load %arg3[%c22_46] : memref<32xf32, #tpu.memory_space<smem>>
    %146 = vector.broadcast %145 : f32 to vector<2x128xf32>
    %147 = arith.mulf %5, %146 : vector<2x128xf32>
    %148 = arith.addf %140, %147 : vector<2x128xf32>
    %c7_47 = arith.constant 7 : index
    %149 = memref.load %arg3[%c7_47] : memref<32xf32, #tpu.memory_space<smem>>
    %150 = vector.broadcast %149 : f32 to vector<2x128xf32>
    %151 = arith.mulf %7, %150 : vector<2x128xf32>
    %152 = arith.addf %144, %151 : vector<2x128xf32>
    %c23_48 = arith.constant 23 : index
    %153 = memref.load %arg3[%c23_48] : memref<32xf32, #tpu.memory_space<smem>>
    %154 = vector.broadcast %153 : f32 to vector<2x128xf32>
    %155 = arith.mulf %7, %154 : vector<2x128xf32>
    %156 = arith.addf %148, %155 : vector<2x128xf32>
    %c1_49 = arith.constant 1 : index
    %157 = memref.load %arg5[%c1_49] : memref<12xf32, #tpu.memory_space<smem>>
    %158 = vector.broadcast %157 : f32 to vector<2x128xf32>
    %159 = arith.addf %152, %158 : vector<2x128xf32>
    %c5_50 = arith.constant 5 : index
    %160 = memref.load %arg5[%c5_50] : memref<12xf32, #tpu.memory_space<smem>>
    %161 = vector.broadcast %160 : f32 to vector<2x128xf32>
    %162 = arith.addf %156, %161 : vector<2x128xf32>
    %163 = math.tanh %159 : vector<2x128xf32>
    %cst_51 = arith.constant 5.000000e-01 : f32
    %164 = vector.broadcast %cst_51 : f32 to vector<2x128xf32>
    %165 = arith.mulf %164, %163 : vector<2x128xf32>
    %cst_52 = arith.constant 5.000000e-01 : f32
    %166 = vector.broadcast %cst_52 : f32 to vector<2x128xf32>
    %167 = arith.addf %165, %166 : vector<2x128xf32>
    %168 = math.tanh %162 : vector<2x128xf32>
    %cst_53 = arith.constant 5.000000e-01 : f32
    %169 = vector.broadcast %cst_53 : f32 to vector<2x128xf32>
    %170 = arith.mulf %169, %168 : vector<2x128xf32>
    %cst_54 = arith.constant 5.000000e-01 : f32
    %171 = vector.broadcast %cst_54 : f32 to vector<2x128xf32>
    %172 = arith.addf %170, %171 : vector<2x128xf32>
    %173 = arith.mulf %172, %3 : vector<2x128xf32>
    %c8 = arith.constant 8 : index
    %174 = memref.load %arg2[%c8] : memref<48xf32, #tpu.memory_space<smem>>
    %175 = vector.broadcast %174 : f32 to vector<2x128xf32>
    %176 = arith.mulf %9, %175 : vector<2x128xf32>
    %c24 = arith.constant 24 : index
    %177 = memref.load %arg2[%c24] : memref<48xf32, #tpu.memory_space<smem>>
    %178 = vector.broadcast %177 : f32 to vector<2x128xf32>
    %179 = arith.mulf %9, %178 : vector<2x128xf32>
    %c9 = arith.constant 9 : index
    %180 = memref.load %arg2[%c9] : memref<48xf32, #tpu.memory_space<smem>>
    %181 = vector.broadcast %180 : f32 to vector<2x128xf32>
    %182 = arith.mulf %11, %181 : vector<2x128xf32>
    %183 = arith.addf %176, %182 : vector<2x128xf32>
    %c25 = arith.constant 25 : index
    %184 = memref.load %arg2[%c25] : memref<48xf32, #tpu.memory_space<smem>>
    %185 = vector.broadcast %184 : f32 to vector<2x128xf32>
    %186 = arith.mulf %11, %185 : vector<2x128xf32>
    %187 = arith.addf %179, %186 : vector<2x128xf32>
    %c10 = arith.constant 10 : index
    %188 = memref.load %arg2[%c10] : memref<48xf32, #tpu.memory_space<smem>>
    %189 = vector.broadcast %188 : f32 to vector<2x128xf32>
    %190 = arith.mulf %13, %189 : vector<2x128xf32>
    %191 = arith.addf %183, %190 : vector<2x128xf32>
    %c26 = arith.constant 26 : index
    %192 = memref.load %arg2[%c26] : memref<48xf32, #tpu.memory_space<smem>>
    %193 = vector.broadcast %192 : f32 to vector<2x128xf32>
    %194 = arith.mulf %13, %193 : vector<2x128xf32>
    %195 = arith.addf %187, %194 : vector<2x128xf32>
    %c11 = arith.constant 11 : index
    %196 = memref.load %arg2[%c11] : memref<48xf32, #tpu.memory_space<smem>>
    %197 = vector.broadcast %196 : f32 to vector<2x128xf32>
    %198 = arith.mulf %15, %197 : vector<2x128xf32>
    %199 = arith.addf %191, %198 : vector<2x128xf32>
    %c27 = arith.constant 27 : index
    %200 = memref.load %arg2[%c27] : memref<48xf32, #tpu.memory_space<smem>>
    %201 = vector.broadcast %200 : f32 to vector<2x128xf32>
    %202 = arith.mulf %15, %201 : vector<2x128xf32>
    %203 = arith.addf %195, %202 : vector<2x128xf32>
    %c8_55 = arith.constant 8 : index
    %204 = memref.load %arg3[%c8_55] : memref<32xf32, #tpu.memory_space<smem>>
    %205 = vector.broadcast %204 : f32 to vector<2x128xf32>
    %206 = arith.mulf %1, %205 : vector<2x128xf32>
    %207 = arith.addf %199, %206 : vector<2x128xf32>
    %c24_56 = arith.constant 24 : index
    %208 = memref.load %arg3[%c24_56] : memref<32xf32, #tpu.memory_space<smem>>
    %209 = vector.broadcast %208 : f32 to vector<2x128xf32>
    %210 = arith.mulf %1, %209 : vector<2x128xf32>
    %211 = arith.addf %203, %210 : vector<2x128xf32>
    %c9_57 = arith.constant 9 : index
    %212 = memref.load %arg3[%c9_57] : memref<32xf32, #tpu.memory_space<smem>>
    %213 = vector.broadcast %212 : f32 to vector<2x128xf32>
    %214 = arith.mulf %3, %213 : vector<2x128xf32>
    %215 = arith.addf %207, %214 : vector<2x128xf32>
    %c25_58 = arith.constant 25 : index
    %216 = memref.load %arg3[%c25_58] : memref<32xf32, #tpu.memory_space<smem>>
    %217 = vector.broadcast %216 : f32 to vector<2x128xf32>
    %218 = arith.mulf %3, %217 : vector<2x128xf32>
    %219 = arith.addf %211, %218 : vector<2x128xf32>
    %c10_59 = arith.constant 10 : index
    %220 = memref.load %arg3[%c10_59] : memref<32xf32, #tpu.memory_space<smem>>
    %221 = vector.broadcast %220 : f32 to vector<2x128xf32>
    %222 = arith.mulf %5, %221 : vector<2x128xf32>
    %223 = arith.addf %215, %222 : vector<2x128xf32>
    %c26_60 = arith.constant 26 : index
    %224 = memref.load %arg3[%c26_60] : memref<32xf32, #tpu.memory_space<smem>>
    %225 = vector.broadcast %224 : f32 to vector<2x128xf32>
    %226 = arith.mulf %5, %225 : vector<2x128xf32>
    %227 = arith.addf %219, %226 : vector<2x128xf32>
    %c11_61 = arith.constant 11 : index
    %228 = memref.load %arg3[%c11_61] : memref<32xf32, #tpu.memory_space<smem>>
    %229 = vector.broadcast %228 : f32 to vector<2x128xf32>
    %230 = arith.mulf %7, %229 : vector<2x128xf32>
    %231 = arith.addf %223, %230 : vector<2x128xf32>
    %c27_62 = arith.constant 27 : index
    %232 = memref.load %arg3[%c27_62] : memref<32xf32, #tpu.memory_space<smem>>
    %233 = vector.broadcast %232 : f32 to vector<2x128xf32>
    %234 = arith.mulf %7, %233 : vector<2x128xf32>
    %235 = arith.addf %227, %234 : vector<2x128xf32>
    %c2_63 = arith.constant 2 : index
    %236 = memref.load %arg5[%c2_63] : memref<12xf32, #tpu.memory_space<smem>>
    %237 = vector.broadcast %236 : f32 to vector<2x128xf32>
    %238 = arith.addf %231, %237 : vector<2x128xf32>
    %c6_64 = arith.constant 6 : index
    %239 = memref.load %arg5[%c6_64] : memref<12xf32, #tpu.memory_space<smem>>
    %240 = vector.broadcast %239 : f32 to vector<2x128xf32>
    %241 = arith.addf %235, %240 : vector<2x128xf32>
    %242 = math.tanh %238 : vector<2x128xf32>
    %cst_65 = arith.constant 5.000000e-01 : f32
    %243 = vector.broadcast %cst_65 : f32 to vector<2x128xf32>
    %244 = arith.mulf %243, %242 : vector<2x128xf32>
    %cst_66 = arith.constant 5.000000e-01 : f32
    %245 = vector.broadcast %cst_66 : f32 to vector<2x128xf32>
    %246 = arith.addf %244, %245 : vector<2x128xf32>
    %247 = math.tanh %241 : vector<2x128xf32>
    %cst_67 = arith.constant 5.000000e-01 : f32
    %248 = vector.broadcast %cst_67 : f32 to vector<2x128xf32>
    %249 = arith.mulf %248, %247 : vector<2x128xf32>
    %cst_68 = arith.constant 5.000000e-01 : f32
    %250 = vector.broadcast %cst_68 : f32 to vector<2x128xf32>
    %251 = arith.addf %249, %250 : vector<2x128xf32>
    %252 = arith.mulf %251, %5 : vector<2x128xf32>
    %c12 = arith.constant 12 : index
    %253 = memref.load %arg2[%c12] : memref<48xf32, #tpu.memory_space<smem>>
    %254 = vector.broadcast %253 : f32 to vector<2x128xf32>
    %255 = arith.mulf %9, %254 : vector<2x128xf32>
    %c28 = arith.constant 28 : index
    %256 = memref.load %arg2[%c28] : memref<48xf32, #tpu.memory_space<smem>>
    %257 = vector.broadcast %256 : f32 to vector<2x128xf32>
    %258 = arith.mulf %9, %257 : vector<2x128xf32>
    %c13 = arith.constant 13 : index
    %259 = memref.load %arg2[%c13] : memref<48xf32, #tpu.memory_space<smem>>
    %260 = vector.broadcast %259 : f32 to vector<2x128xf32>
    %261 = arith.mulf %11, %260 : vector<2x128xf32>
    %262 = arith.addf %255, %261 : vector<2x128xf32>
    %c29 = arith.constant 29 : index
    %263 = memref.load %arg2[%c29] : memref<48xf32, #tpu.memory_space<smem>>
    %264 = vector.broadcast %263 : f32 to vector<2x128xf32>
    %265 = arith.mulf %11, %264 : vector<2x128xf32>
    %266 = arith.addf %258, %265 : vector<2x128xf32>
    %c14 = arith.constant 14 : index
    %267 = memref.load %arg2[%c14] : memref<48xf32, #tpu.memory_space<smem>>
    %268 = vector.broadcast %267 : f32 to vector<2x128xf32>
    %269 = arith.mulf %13, %268 : vector<2x128xf32>
    %270 = arith.addf %262, %269 : vector<2x128xf32>
    %c30 = arith.constant 30 : index
    %271 = memref.load %arg2[%c30] : memref<48xf32, #tpu.memory_space<smem>>
    %272 = vector.broadcast %271 : f32 to vector<2x128xf32>
    %273 = arith.mulf %13, %272 : vector<2x128xf32>
    %274 = arith.addf %266, %273 : vector<2x128xf32>
    %c15 = arith.constant 15 : index
    %275 = memref.load %arg2[%c15] : memref<48xf32, #tpu.memory_space<smem>>
    %276 = vector.broadcast %275 : f32 to vector<2x128xf32>
    %277 = arith.mulf %15, %276 : vector<2x128xf32>
    %278 = arith.addf %270, %277 : vector<2x128xf32>
    %c31 = arith.constant 31 : index
    %279 = memref.load %arg2[%c31] : memref<48xf32, #tpu.memory_space<smem>>
    %280 = vector.broadcast %279 : f32 to vector<2x128xf32>
    %281 = arith.mulf %15, %280 : vector<2x128xf32>
    %282 = arith.addf %274, %281 : vector<2x128xf32>
    %c12_69 = arith.constant 12 : index
    %283 = memref.load %arg3[%c12_69] : memref<32xf32, #tpu.memory_space<smem>>
    %284 = vector.broadcast %283 : f32 to vector<2x128xf32>
    %285 = arith.mulf %1, %284 : vector<2x128xf32>
    %286 = arith.addf %278, %285 : vector<2x128xf32>
    %c28_70 = arith.constant 28 : index
    %287 = memref.load %arg3[%c28_70] : memref<32xf32, #tpu.memory_space<smem>>
    %288 = vector.broadcast %287 : f32 to vector<2x128xf32>
    %289 = arith.mulf %1, %288 : vector<2x128xf32>
    %290 = arith.addf %282, %289 : vector<2x128xf32>
    %c13_71 = arith.constant 13 : index
    %291 = memref.load %arg3[%c13_71] : memref<32xf32, #tpu.memory_space<smem>>
    %292 = vector.broadcast %291 : f32 to vector<2x128xf32>
    %293 = arith.mulf %3, %292 : vector<2x128xf32>
    %294 = arith.addf %286, %293 : vector<2x128xf32>
    %c29_72 = arith.constant 29 : index
    %295 = memref.load %arg3[%c29_72] : memref<32xf32, #tpu.memory_space<smem>>
    %296 = vector.broadcast %295 : f32 to vector<2x128xf32>
    %297 = arith.mulf %3, %296 : vector<2x128xf32>
    %298 = arith.addf %290, %297 : vector<2x128xf32>
    %c14_73 = arith.constant 14 : index
    %299 = memref.load %arg3[%c14_73] : memref<32xf32, #tpu.memory_space<smem>>
    %300 = vector.broadcast %299 : f32 to vector<2x128xf32>
    %301 = arith.mulf %5, %300 : vector<2x128xf32>
    %302 = arith.addf %294, %301 : vector<2x128xf32>
    %c30_74 = arith.constant 30 : index
    %303 = memref.load %arg3[%c30_74] : memref<32xf32, #tpu.memory_space<smem>>
    %304 = vector.broadcast %303 : f32 to vector<2x128xf32>
    %305 = arith.mulf %5, %304 : vector<2x128xf32>
    %306 = arith.addf %298, %305 : vector<2x128xf32>
    %c15_75 = arith.constant 15 : index
    %307 = memref.load %arg3[%c15_75] : memref<32xf32, #tpu.memory_space<smem>>
    %308 = vector.broadcast %307 : f32 to vector<2x128xf32>
    %309 = arith.mulf %7, %308 : vector<2x128xf32>
    %310 = arith.addf %302, %309 : vector<2x128xf32>
    %c31_76 = arith.constant 31 : index
    %311 = memref.load %arg3[%c31_76] : memref<32xf32, #tpu.memory_space<smem>>
    %312 = vector.broadcast %311 : f32 to vector<2x128xf32>
    %313 = arith.mulf %7, %312 : vector<2x128xf32>
    %314 = arith.addf %306, %313 : vector<2x128xf32>
    %c3_77 = arith.constant 3 : index
    %315 = memref.load %arg5[%c3_77] : memref<12xf32, #tpu.memory_space<smem>>
    %316 = vector.broadcast %315 : f32 to vector<2x128xf32>
    %317 = arith.addf %310, %316 : vector<2x128xf32>
    %c7_78 = arith.constant 7 : index
    %318 = memref.load %arg5[%c7_78] : memref<12xf32, #tpu.memory_space<smem>>
    %319 = vector.broadcast %318 : f32 to vector<2x128xf32>
    %320 = arith.addf %314, %319 : vector<2x128xf32>
    %321 = math.tanh %317 : vector<2x128xf32>
    %cst_79 = arith.constant 5.000000e-01 : f32
    %322 = vector.broadcast %cst_79 : f32 to vector<2x128xf32>
    %323 = arith.mulf %322, %321 : vector<2x128xf32>
    %cst_80 = arith.constant 5.000000e-01 : f32
    %324 = vector.broadcast %cst_80 : f32 to vector<2x128xf32>
    %325 = arith.addf %323, %324 : vector<2x128xf32>
    %326 = math.tanh %320 : vector<2x128xf32>
    %cst_81 = arith.constant 5.000000e-01 : f32
    %327 = vector.broadcast %cst_81 : f32 to vector<2x128xf32>
    %328 = arith.mulf %327, %326 : vector<2x128xf32>
    %cst_82 = arith.constant 5.000000e-01 : f32
    %329 = vector.broadcast %cst_82 : f32 to vector<2x128xf32>
    %330 = arith.addf %328, %329 : vector<2x128xf32>
    %331 = arith.mulf %330, %7 : vector<2x128xf32>
    %c32 = arith.constant 32 : index
    %332 = memref.load %arg2[%c32] : memref<48xf32, #tpu.memory_space<smem>>
    %333 = vector.broadcast %332 : f32 to vector<2x128xf32>
    %334 = arith.mulf %9, %333 : vector<2x128xf32>
    %c33 = arith.constant 33 : index
    %335 = memref.load %arg2[%c33] : memref<48xf32, #tpu.memory_space<smem>>
    %336 = vector.broadcast %335 : f32 to vector<2x128xf32>
    %337 = arith.mulf %11, %336 : vector<2x128xf32>
    %338 = arith.addf %334, %337 : vector<2x128xf32>
    %c34 = arith.constant 34 : index
    %339 = memref.load %arg2[%c34] : memref<48xf32, #tpu.memory_space<smem>>
    %340 = vector.broadcast %339 : f32 to vector<2x128xf32>
    %341 = arith.mulf %13, %340 : vector<2x128xf32>
    %342 = arith.addf %338, %341 : vector<2x128xf32>
    %c35 = arith.constant 35 : index
    %343 = memref.load %arg2[%c35] : memref<48xf32, #tpu.memory_space<smem>>
    %344 = vector.broadcast %343 : f32 to vector<2x128xf32>
    %345 = arith.mulf %15, %344 : vector<2x128xf32>
    %346 = arith.addf %342, %345 : vector<2x128xf32>
    %c0_83 = arith.constant 0 : index
    %347 = memref.load %arg4[%c0_83] : memref<16xf32, #tpu.memory_space<smem>>
    %348 = vector.broadcast %347 : f32 to vector<2x128xf32>
    %349 = arith.mulf %94, %348 : vector<2x128xf32>
    %350 = arith.addf %346, %349 : vector<2x128xf32>
    %c1_84 = arith.constant 1 : index
    %351 = memref.load %arg4[%c1_84] : memref<16xf32, #tpu.memory_space<smem>>
    %352 = vector.broadcast %351 : f32 to vector<2x128xf32>
    %353 = arith.mulf %173, %352 : vector<2x128xf32>
    %354 = arith.addf %350, %353 : vector<2x128xf32>
    %c2_85 = arith.constant 2 : index
    %355 = memref.load %arg4[%c2_85] : memref<16xf32, #tpu.memory_space<smem>>
    %356 = vector.broadcast %355 : f32 to vector<2x128xf32>
    %357 = arith.mulf %252, %356 : vector<2x128xf32>
    %358 = arith.addf %354, %357 : vector<2x128xf32>
    %c3_86 = arith.constant 3 : index
    %359 = memref.load %arg4[%c3_86] : memref<16xf32, #tpu.memory_space<smem>>
    %360 = vector.broadcast %359 : f32 to vector<2x128xf32>
    %361 = arith.mulf %331, %360 : vector<2x128xf32>
    %362 = arith.addf %358, %361 : vector<2x128xf32>
    %c8_87 = arith.constant 8 : index
    %363 = memref.load %arg5[%c8_87] : memref<12xf32, #tpu.memory_space<smem>>
    %364 = vector.broadcast %363 : f32 to vector<2x128xf32>
    %365 = arith.addf %362, %364 : vector<2x128xf32>
    %366 = math.tanh %365 : vector<2x128xf32>
    %367 = arith.subf %366, %1 : vector<2x128xf32>
    %368 = arith.mulf %88, %367 : vector<2x128xf32>
    %369 = arith.addf %1, %368 : vector<2x128xf32>
    %c0_88 = arith.constant 0 : index
    %c0_89 = arith.constant 0 : index
    %c0_90 = arith.constant 0 : index
    %c0_91 = arith.constant 0 : index
    %370 = vector.load %arg8[%c0_88, %c0_89, %c0_90, %c0_91] : memref<2x4x2x128xf32, #tpu.memory_space<vmem>>, vector<1x1x2x128xf32>
    %371 = vector.shape_cast %370 : vector<1x1x2x128xf32> to vector<2x128xf32>
    %372 = vector.shape_cast %369 : vector<2x128xf32> to vector<1x1x2x128xf32>
    tpu.vector_store %arg8[%c0_88, %c0_89, %c0_90, %c0_91], %372 {strides = array<i32>} : memref<2x4x2x128xf32, #tpu.memory_space<vmem>>, vector<1x1x2x128xf32>,
    %c36 = arith.constant 36 : index
    %373 = memref.load %arg2[%c36] : memref<48xf32, #tpu.memory_space<smem>>
    %374 = vector.broadcast %373 : f32 to vector<2x128xf32>
    %375 = arith.mulf %9, %374 : vector<2x128xf32>
    %c37 = arith.constant 37 : index
    %376 = memref.load %arg2[%c37] : memref<48xf32, #tpu.memory_space<smem>>
    %377 = vector.broadcast %376 : f32 to vector<2x128xf32>
    %378 = arith.mulf %11, %377 : vector<2x128xf32>
    %379 = arith.addf %375, %378 : vector<2x128xf32>
    %c38 = arith.constant 38 : index
    %380 = memref.load %arg2[%c38] : memref<48xf32, #tpu.memory_space<smem>>
    %381 = vector.broadcast %380 : f32 to vector<2x128xf32>
    %382 = arith.mulf %13, %381 : vector<2x128xf32>
    %383 = arith.addf %379, %382 : vector<2x128xf32>
    %c39 = arith.constant 39 : index
    %384 = memref.load %arg2[%c39] : memref<48xf32, #tpu.memory_space<smem>>
    %385 = vector.broadcast %384 : f32 to vector<2x128xf32>
    %386 = arith.mulf %15, %385 : vector<2x128xf32>
    %387 = arith.addf %383, %386 : vector<2x128xf32>
    %c4_92 = arith.constant 4 : index
    %388 = memref.load %arg4[%c4_92] : memref<16xf32, #tpu.memory_space<smem>>
    %389 = vector.broadcast %388 : f32 to vector<2x128xf32>
    %390 = arith.mulf %94, %389 : vector<2x128xf32>
    %391 = arith.addf %387, %390 : vector<2x128xf32>
    %c5_93 = arith.constant 5 : index
    %392 = memref.load %arg4[%c5_93] : memref<16xf32, #tpu.memory_space<smem>>
    %393 = vector.broadcast %392 : f32 to vector<2x128xf32>
    %394 = arith.mulf %173, %393 : vector<2x128xf32>
    %395 = arith.addf %391, %394 : vector<2x128xf32>
    %c6_94 = arith.constant 6 : index
    %396 = memref.load %arg4[%c6_94] : memref<16xf32, #tpu.memory_space<smem>>
    %397 = vector.broadcast %396 : f32 to vector<2x128xf32>
    %398 = arith.mulf %252, %397 : vector<2x128xf32>
    %399 = arith.addf %395, %398 : vector<2x128xf32>
    %c7_95 = arith.constant 7 : index
    %400 = memref.load %arg4[%c7_95] : memref<16xf32, #tpu.memory_space<smem>>
    %401 = vector.broadcast %400 : f32 to vector<2x128xf32>
    %402 = arith.mulf %331, %401 : vector<2x128xf32>
    %403 = arith.addf %399, %402 : vector<2x128xf32>
    %c9_96 = arith.constant 9 : index
    %404 = memref.load %arg5[%c9_96] : memref<12xf32, #tpu.memory_space<smem>>
    %405 = vector.broadcast %404 : f32 to vector<2x128xf32>
    %406 = arith.addf %403, %405 : vector<2x128xf32>
    %407 = math.tanh %406 : vector<2x128xf32>
    %408 = arith.subf %407, %3 : vector<2x128xf32>
    %409 = arith.mulf %167, %408 : vector<2x128xf32>
    %410 = arith.addf %3, %409 : vector<2x128xf32>
    %c0_97 = arith.constant 0 : index
    %c1_98 = arith.constant 1 : index
    %c0_99 = arith.constant 0 : index
    %c0_100 = arith.constant 0 : index
    %411 = vector.load %arg8[%c0_97, %c1_98, %c0_99, %c0_100] : memref<2x4x2x128xf32, #tpu.memory_space<vmem>>, vector<1x1x2x128xf32>
    %412 = vector.shape_cast %411 : vector<1x1x2x128xf32> to vector<2x128xf32>
    %413 = vector.shape_cast %410 : vector<2x128xf32> to vector<1x1x2x128xf32>
    tpu.vector_store %arg8[%c0_97, %c1_98, %c0_99, %c0_100], %413 {strides = array<i32>} : memref<2x4x2x128xf32, #tpu.memory_space<vmem>>, vector<1x1x2x128xf32>,
    %c40 = arith.constant 40 : index
    %414 = memref.load %arg2[%c40] : memref<48xf32, #tpu.memory_space<smem>>
    %415 = vector.broadcast %414 : f32 to vector<2x128xf32>
    %416 = arith.mulf %9, %415 : vector<2x128xf32>
    %c41 = arith.constant 41 : index
    %417 = memref.load %arg2[%c41] : memref<48xf32, #tpu.memory_space<smem>>
    %418 = vector.broadcast %417 : f32 to vector<2x128xf32>
    %419 = arith.mulf %11, %418 : vector<2x128xf32>
    %420 = arith.addf %416, %419 : vector<2x128xf32>
    %c42 = arith.constant 42 : index
    %421 = memref.load %arg2[%c42] : memref<48xf32, #tpu.memory_space<smem>>
    %422 = vector.broadcast %421 : f32 to vector<2x128xf32>
    %423 = arith.mulf %13, %422 : vector<2x128xf32>
    %424 = arith.addf %420, %423 : vector<2x128xf32>
    %c43 = arith.constant 43 : index
    %425 = memref.load %arg2[%c43] : memref<48xf32, #tpu.memory_space<smem>>
    %426 = vector.broadcast %425 : f32 to vector<2x128xf32>
    %427 = arith.mulf %15, %426 : vector<2x128xf32>
    %428 = arith.addf %424, %427 : vector<2x128xf32>
    %c8_101 = arith.constant 8 : index
    %429 = memref.load %arg4[%c8_101] : memref<16xf32, #tpu.memory_space<smem>>
    %430 = vector.broadcast %429 : f32 to vector<2x128xf32>
    %431 = arith.mulf %94, %430 : vector<2x128xf32>
    %432 = arith.addf %428, %431 : vector<2x128xf32>
    %c9_102 = arith.constant 9 : index
    %433 = memref.load %arg4[%c9_102] : memref<16xf32, #tpu.memory_space<smem>>
    %434 = vector.broadcast %433 : f32 to vector<2x128xf32>
    %435 = arith.mulf %173, %434 : vector<2x128xf32>
    %436 = arith.addf %432, %435 : vector<2x128xf32>
    %c10_103 = arith.constant 10 : index
    %437 = memref.load %arg4[%c10_103] : memref<16xf32, #tpu.memory_space<smem>>
    %438 = vector.broadcast %437 : f32 to vector<2x128xf32>
    %439 = arith.mulf %252, %438 : vector<2x128xf32>
    %440 = arith.addf %436, %439 : vector<2x128xf32>
    %c11_104 = arith.constant 11 : index
    %441 = memref.load %arg4[%c11_104] : memref<16xf32, #tpu.memory_space<smem>>
    %442 = vector.broadcast %441 : f32 to vector<2x128xf32>
    %443 = arith.mulf %331, %442 : vector<2x128xf32>
    %444 = arith.addf %440, %443 : vector<2x128xf32>
    %c10_105 = arith.constant 10 : index
    %445 = memref.load %arg5[%c10_105] : memref<12xf32, #tpu.memory_space<smem>>
    %446 = vector.broadcast %445 : f32 to vector<2x128xf32>
    %447 = arith.addf %444, %446 : vector<2x128xf32>
    %448 = math.tanh %447 : vector<2x128xf32>
    %449 = arith.subf %448, %5 : vector<2x128xf32>
    %450 = arith.mulf %246, %449 : vector<2x128xf32>
    %451 = arith.addf %5, %450 : vector<2x128xf32>
    %c0_106 = arith.constant 0 : index
    %c2_107 = arith.constant 2 : index
    %c0_108 = arith.constant 0 : index
    %c0_109 = arith.constant 0 : index
    %452 = vector.load %arg8[%c0_106, %c2_107, %c0_108, %c0_109] : memref<2x4x2x128xf32, #tpu.memory_space<vmem>>, vector<1x1x2x128xf32>
    %453 = vector.shape_cast %452 : vector<1x1x2x128xf32> to vector<2x128xf32>
    %454 = vector.shape_cast %451 : vector<2x128xf32> to vector<1x1x2x128xf32>
    tpu.vector_store %arg8[%c0_106, %c2_107, %c0_108, %c0_109], %454 {strides = array<i32>} : memref<2x4x2x128xf32, #tpu.memory_space<vmem>>, vector<1x1x2x128xf32>,
    %c44 = arith.constant 44 : index
    %455 = memref.load %arg2[%c44] : memref<48xf32, #tpu.memory_space<smem>>
    %456 = vector.broadcast %455 : f32 to vector<2x128xf32>
    %457 = arith.mulf %9, %456 : vector<2x128xf32>
    %c45 = arith.constant 45 : index
    %458 = memref.load %arg2[%c45] : memref<48xf32, #tpu.memory_space<smem>>
    %459 = vector.broadcast %458 : f32 to vector<2x128xf32>
    %460 = arith.mulf %11, %459 : vector<2x128xf32>
    %461 = arith.addf %457, %460 : vector<2x128xf32>
    %c46 = arith.constant 46 : index
    %462 = memref.load %arg2[%c46] : memref<48xf32, #tpu.memory_space<smem>>
    %463 = vector.broadcast %462 : f32 to vector<2x128xf32>
    %464 = arith.mulf %13, %463 : vector<2x128xf32>
    %465 = arith.addf %461, %464 : vector<2x128xf32>
    %c47 = arith.constant 47 : index
    %466 = memref.load %arg2[%c47] : memref<48xf32, #tpu.memory_space<smem>>
    %467 = vector.broadcast %466 : f32 to vector<2x128xf32>
    %468 = arith.mulf %15, %467 : vector<2x128xf32>
    %469 = arith.addf %465, %468 : vector<2x128xf32>
    %c12_110 = arith.constant 12 : index
    %470 = memref.load %arg4[%c12_110] : memref<16xf32, #tpu.memory_space<smem>>
    %471 = vector.broadcast %470 : f32 to vector<2x128xf32>
    %472 = arith.mulf %94, %471 : vector<2x128xf32>
    %473 = arith.addf %469, %472 : vector<2x128xf32>
    %c13_111 = arith.constant 13 : index
    %474 = memref.load %arg4[%c13_111] : memref<16xf32, #tpu.memory_space<smem>>
    %475 = vector.broadcast %474 : f32 to vector<2x128xf32>
    %476 = arith.mulf %173, %475 : vector<2x128xf32>
    %477 = arith.addf %473, %476 : vector<2x128xf32>
    %c14_112 = arith.constant 14 : index
    %478 = memref.load %arg4[%c14_112] : memref<16xf32, #tpu.memory_space<smem>>
    %479 = vector.broadcast %478 : f32 to vector<2x128xf32>
    %480 = arith.mulf %252, %479 : vector<2x128xf32>
    %481 = arith.addf %477, %480 : vector<2x128xf32>
    %c15_113 = arith.constant 15 : index
    %482 = memref.load %arg4[%c15_113] : memref<16xf32, #tpu.memory_space<smem>>
    %483 = vector.broadcast %482 : f32 to vector<2x128xf32>
    %484 = arith.mulf %331, %483 : vector<2x128xf32>
    %485 = arith.addf %481, %484 : vector<2x128xf32>
    %c11_114 = arith.constant 11 : index
    %486 = memref.load %arg5[%c11_114] : memref<12xf32, #tpu.memory_space<smem>>
    %487 = vector.broadcast %486 : f32 to vector<2x128xf32>
    %488 = arith.addf %485, %487 : vector<2x128xf32>
    %489 = math.tanh %488 : vector<2x128xf32>
    %490 = arith.subf %489, %7 : vector<2x128xf32>
    %491 = arith.mulf %325, %490 : vector<2x128xf32>
    %492 = arith.addf %7, %491 : vector<2x128xf32>
    %c0_115 = arith.constant 0 : index
    %c3_116 = arith.constant 3 : index
    %c0_117 = arith.constant 0 : index
    %c0_118 = arith.constant 0 : index
    %493 = vector.load %arg8[%c0_115, %c3_116, %c0_117, %c0_118] : memref<2x4x2x128xf32, #tpu.memory_space<vmem>>, vector<1x1x2x128xf32>
    %494 = vector.shape_cast %493 : vector<1x1x2x128xf32> to vector<2x128xf32>
    %495 = vector.shape_cast %492 : vector<2x128xf32> to vector<1x1x2x128xf32>
    tpu.vector_store %arg8[%c0_115, %c3_116, %c0_117, %c0_118], %495 {strides = array<i32>} : memref<2x4x2x128xf32, #tpu.memory_space<vmem>>, vector<1x1x2x128xf32>,
    %c1_119 = arith.constant 1 : index
    %c0_120 = arith.constant 0 : index
    %c0_121 = arith.constant 0 : index
    %c0_122 = arith.constant 0 : index
    %496 = vector.load %arg6[%c1_119, %c0_120, %c0_121, %c0_122] : memref<2x4x2x128xf32, #tpu.memory_space<vmem>>, vector<1x1x2x128xf32>
    %497 = vector.shape_cast %496 : vector<1x1x2x128xf32> to vector<2x128xf32>
    %c1_123 = arith.constant 1 : index
    %c1_124 = arith.constant 1 : index
    %c0_125 = arith.constant 0 : index
    %c0_126 = arith.constant 0 : index
    %498 = vector.load %arg6[%c1_123, %c1_124, %c0_125, %c0_126] : memref<2x4x2x128xf32, #tpu.memory_space<vmem>>, vector<1x1x2x128xf32>
    %499 = vector.shape_cast %498 : vector<1x1x2x128xf32> to vector<2x128xf32>
    %c1_127 = arith.constant 1 : index
    %c2_128 = arith.constant 2 : index
    %c0_129 = arith.constant 0 : index
    %c0_130 = arith.constant 0 : index
    %500 = vector.load %arg6[%c1_127, %c2_128, %c0_129, %c0_130] : memref<2x4x2x128xf32, #tpu.memory_space<vmem>>, vector<1x1x2x128xf32>
    %501 = vector.shape_cast %500 : vector<1x1x2x128xf32> to vector<2x128xf32>
    %c1_131 = arith.constant 1 : index
    %c3_132 = arith.constant 3 : index
    %c0_133 = arith.constant 0 : index
    %c0_134 = arith.constant 0 : index
    %502 = vector.load %arg6[%c1_131, %c3_132, %c0_133, %c0_134] : memref<2x4x2x128xf32, #tpu.memory_space<vmem>>, vector<1x1x2x128xf32>
    %503 = vector.shape_cast %502 : vector<1x1x2x128xf32> to vector<2x128xf32>
    %c0_135 = arith.constant 0 : index
    %504 = memref.load %arg2[%c0_135] : memref<48xf32, #tpu.memory_space<smem>>
    %505 = vector.broadcast %504 : f32 to vector<2x128xf32>
    %506 = arith.mulf %497, %505 : vector<2x128xf32>
    %c16_136 = arith.constant 16 : index
    %507 = memref.load %arg2[%c16_136] : memref<48xf32, #tpu.memory_space<smem>>
    %508 = vector.broadcast %507 : f32 to vector<2x128xf32>
    %509 = arith.mulf %497, %508 : vector<2x128xf32>
    %c1_137 = arith.constant 1 : index
    %510 = memref.load %arg2[%c1_137] : memref<48xf32, #tpu.memory_space<smem>>
    %511 = vector.broadcast %510 : f32 to vector<2x128xf32>
    %512 = arith.mulf %499, %511 : vector<2x128xf32>
    %513 = arith.addf %506, %512 : vector<2x128xf32>
    %c17_138 = arith.constant 17 : index
    %514 = memref.load %arg2[%c17_138] : memref<48xf32, #tpu.memory_space<smem>>
    %515 = vector.broadcast %514 : f32 to vector<2x128xf32>
    %516 = arith.mulf %499, %515 : vector<2x128xf32>
    %517 = arith.addf %509, %516 : vector<2x128xf32>
    %c2_139 = arith.constant 2 : index
    %518 = memref.load %arg2[%c2_139] : memref<48xf32, #tpu.memory_space<smem>>
    %519 = vector.broadcast %518 : f32 to vector<2x128xf32>
    %520 = arith.mulf %501, %519 : vector<2x128xf32>
    %521 = arith.addf %513, %520 : vector<2x128xf32>
    %c18_140 = arith.constant 18 : index
    %522 = memref.load %arg2[%c18_140] : memref<48xf32, #tpu.memory_space<smem>>
    %523 = vector.broadcast %522 : f32 to vector<2x128xf32>
    %524 = arith.mulf %501, %523 : vector<2x128xf32>
    %525 = arith.addf %517, %524 : vector<2x128xf32>
    %c3_141 = arith.constant 3 : index
    %526 = memref.load %arg2[%c3_141] : memref<48xf32, #tpu.memory_space<smem>>
    %527 = vector.broadcast %526 : f32 to vector<2x128xf32>
    %528 = arith.mulf %503, %527 : vector<2x128xf32>
    %529 = arith.addf %521, %528 : vector<2x128xf32>
    %c19_142 = arith.constant 19 : index
    %530 = memref.load %arg2[%c19_142] : memref<48xf32, #tpu.memory_space<smem>>
    %531 = vector.broadcast %530 : f32 to vector<2x128xf32>
    %532 = arith.mulf %503, %531 : vector<2x128xf32>
    %533 = arith.addf %525, %532 : vector<2x128xf32>
    %c0_143 = arith.constant 0 : index
    %534 = memref.load %arg3[%c0_143] : memref<32xf32, #tpu.memory_space<smem>>
    %535 = vector.broadcast %534 : f32 to vector<2x128xf32>
    %536 = arith.mulf %1, %535 : vector<2x128xf32>
    %537 = arith.addf %529, %536 : vector<2x128xf32>
    %c16_144 = arith.constant 16 : index
    %538 = memref.load %arg3[%c16_144] : memref<32xf32, #tpu.memory_space<smem>>
    %539 = vector.broadcast %538 : f32 to vector<2x128xf32>
    %540 = arith.mulf %1, %539 : vector<2x128xf32>
    %541 = arith.addf %533, %540 : vector<2x128xf32>
    %c1_145 = arith.constant 1 : index
    %542 = memref.load %arg3[%c1_145] : memref<32xf32, #tpu.memory_space<smem>>
    %543 = vector.broadcast %542 : f32 to vector<2x128xf32>
    %544 = arith.mulf %3, %543 : vector<2x128xf32>
    %545 = arith.addf %537, %544 : vector<2x128xf32>
    %c17_146 = arith.constant 17 : index
    %546 = memref.load %arg3[%c17_146] : memref<32xf32, #tpu.memory_space<smem>>
    %547 = vector.broadcast %546 : f32 to vector<2x128xf32>
    %548 = arith.mulf %3, %547 : vector<2x128xf32>
    %549 = arith.addf %541, %548 : vector<2x128xf32>
    %c2_147 = arith.constant 2 : index
    %550 = memref.load %arg3[%c2_147] : memref<32xf32, #tpu.memory_space<smem>>
    %551 = vector.broadcast %550 : f32 to vector<2x128xf32>
    %552 = arith.mulf %5, %551 : vector<2x128xf32>
    %553 = arith.addf %545, %552 : vector<2x128xf32>
    %c18_148 = arith.constant 18 : index
    %554 = memref.load %arg3[%c18_148] : memref<32xf32, #tpu.memory_space<smem>>
    %555 = vector.broadcast %554 : f32 to vector<2x128xf32>
    %556 = arith.mulf %5, %555 : vector<2x128xf32>
    %557 = arith.addf %549, %556 : vector<2x128xf32>
    %c3_149 = arith.constant 3 : index
    %558 = memref.load %arg3[%c3_149] : memref<32xf32, #tpu.memory_space<smem>>
    %559 = vector.broadcast %558 : f32 to vector<2x128xf32>
    %560 = arith.mulf %7, %559 : vector<2x128xf32>
    %561 = arith.addf %553, %560 : vector<2x128xf32>
    %c19_150 = arith.constant 19 : index
    %562 = memref.load %arg3[%c19_150] : memref<32xf32, #tpu.memory_space<smem>>
    %563 = vector.broadcast %562 : f32 to vector<2x128xf32>
    %564 = arith.mulf %7, %563 : vector<2x128xf32>
    %565 = arith.addf %557, %564 : vector<2x128xf32>
    %c0_151 = arith.constant 0 : index
    %566 = memref.load %arg5[%c0_151] : memref<12xf32, #tpu.memory_space<smem>>
    %567 = vector.broadcast %566 : f32 to vector<2x128xf32>
    %568 = arith.addf %561, %567 : vector<2x128xf32>
    %c4_152 = arith.constant 4 : index
    %569 = memref.load %arg5[%c4_152] : memref<12xf32, #tpu.memory_space<smem>>
    %570 = vector.broadcast %569 : f32 to vector<2x128xf32>
    %571 = arith.addf %565, %570 : vector<2x128xf32>
    %572 = math.tanh %568 : vector<2x128xf32>
    %cst_153 = arith.constant 5.000000e-01 : f32
    %573 = vector.broadcast %cst_153 : f32 to vector<2x128xf32>
    %574 = arith.mulf %573, %572 : vector<2x128xf32>
    %cst_154 = arith.constant 5.000000e-01 : f32
    %575 = vector.broadcast %cst_154 : f32 to vector<2x128xf32>
    %576 = arith.addf %574, %575 : vector<2x128xf32>
    %577 = math.tanh %571 : vector<2x128xf32>
    %cst_155 = arith.constant 5.000000e-01 : f32
    %578 = vector.broadcast %cst_155 : f32 to vector<2x128xf32>
    %579 = arith.mulf %578, %577 : vector<2x128xf32>
    %cst_156 = arith.constant 5.000000e-01 : f32
    %580 = vector.broadcast %cst_156 : f32 to vector<2x128xf32>
    %581 = arith.addf %579, %580 : vector<2x128xf32>
    %582 = arith.mulf %581, %1 : vector<2x128xf32>
    %c4_157 = arith.constant 4 : index
    %583 = memref.load %arg2[%c4_157] : memref<48xf32, #tpu.memory_space<smem>>
    %584 = vector.broadcast %583 : f32 to vector<2x128xf32>
    %585 = arith.mulf %497, %584 : vector<2x128xf32>
    %c20_158 = arith.constant 20 : index
    %586 = memref.load %arg2[%c20_158] : memref<48xf32, #tpu.memory_space<smem>>
    %587 = vector.broadcast %586 : f32 to vector<2x128xf32>
    %588 = arith.mulf %497, %587 : vector<2x128xf32>
    %c5_159 = arith.constant 5 : index
    %589 = memref.load %arg2[%c5_159] : memref<48xf32, #tpu.memory_space<smem>>
    %590 = vector.broadcast %589 : f32 to vector<2x128xf32>
    %591 = arith.mulf %499, %590 : vector<2x128xf32>
    %592 = arith.addf %585, %591 : vector<2x128xf32>
    %c21_160 = arith.constant 21 : index
    %593 = memref.load %arg2[%c21_160] : memref<48xf32, #tpu.memory_space<smem>>
    %594 = vector.broadcast %593 : f32 to vector<2x128xf32>
    %595 = arith.mulf %499, %594 : vector<2x128xf32>
    %596 = arith.addf %588, %595 : vector<2x128xf32>
    %c6_161 = arith.constant 6 : index
    %597 = memref.load %arg2[%c6_161] : memref<48xf32, #tpu.memory_space<smem>>
    %598 = vector.broadcast %597 : f32 to vector<2x128xf32>
    %599 = arith.mulf %501, %598 : vector<2x128xf32>
    %600 = arith.addf %592, %599 : vector<2x128xf32>
    %c22_162 = arith.constant 22 : index
    %601 = memref.load %arg2[%c22_162] : memref<48xf32, #tpu.memory_space<smem>>
    %602 = vector.broadcast %601 : f32 to vector<2x128xf32>
    %603 = arith.mulf %501, %602 : vector<2x128xf32>
    %604 = arith.addf %596, %603 : vector<2x128xf32>
    %c7_163 = arith.constant 7 : index
    %605 = memref.load %arg2[%c7_163] : memref<48xf32, #tpu.memory_space<smem>>
    %606 = vector.broadcast %605 : f32 to vector<2x128xf32>
    %607 = arith.mulf %503, %606 : vector<2x128xf32>
    %608 = arith.addf %600, %607 : vector<2x128xf32>
    %c23_164 = arith.constant 23 : index
    %609 = memref.load %arg2[%c23_164] : memref<48xf32, #tpu.memory_space<smem>>
    %610 = vector.broadcast %609 : f32 to vector<2x128xf32>
    %611 = arith.mulf %503, %610 : vector<2x128xf32>
    %612 = arith.addf %604, %611 : vector<2x128xf32>
    %c4_165 = arith.constant 4 : index
    %613 = memref.load %arg3[%c4_165] : memref<32xf32, #tpu.memory_space<smem>>
    %614 = vector.broadcast %613 : f32 to vector<2x128xf32>
    %615 = arith.mulf %1, %614 : vector<2x128xf32>
    %616 = arith.addf %608, %615 : vector<2x128xf32>
    %c20_166 = arith.constant 20 : index
    %617 = memref.load %arg3[%c20_166] : memref<32xf32, #tpu.memory_space<smem>>
    %618 = vector.broadcast %617 : f32 to vector<2x128xf32>
    %619 = arith.mulf %1, %618 : vector<2x128xf32>
    %620 = arith.addf %612, %619 : vector<2x128xf32>
    %c5_167 = arith.constant 5 : index
    %621 = memref.load %arg3[%c5_167] : memref<32xf32, #tpu.memory_space<smem>>
    %622 = vector.broadcast %621 : f32 to vector<2x128xf32>
    %623 = arith.mulf %3, %622 : vector<2x128xf32>
    %624 = arith.addf %616, %623 : vector<2x128xf32>
    %c21_168 = arith.constant 21 : index
    %625 = memref.load %arg3[%c21_168] : memref<32xf32, #tpu.memory_space<smem>>
    %626 = vector.broadcast %625 : f32 to vector<2x128xf32>
    %627 = arith.mulf %3, %626 : vector<2x128xf32>
    %628 = arith.addf %620, %627 : vector<2x128xf32>
    %c6_169 = arith.constant 6 : index
    %629 = memref.load %arg3[%c6_169] : memref<32xf32, #tpu.memory_space<smem>>
    %630 = vector.broadcast %629 : f32 to vector<2x128xf32>
    %631 = arith.mulf %5, %630 : vector<2x128xf32>
    %632 = arith.addf %624, %631 : vector<2x128xf32>
    %c22_170 = arith.constant 22 : index
    %633 = memref.load %arg3[%c22_170] : memref<32xf32, #tpu.memory_space<smem>>
    %634 = vector.broadcast %633 : f32 to vector<2x128xf32>
    %635 = arith.mulf %5, %634 : vector<2x128xf32>
    %636 = arith.addf %628, %635 : vector<2x128xf32>
    %c7_171 = arith.constant 7 : index
    %637 = memref.load %arg3[%c7_171] : memref<32xf32, #tpu.memory_space<smem>>
    %638 = vector.broadcast %637 : f32 to vector<2x128xf32>
    %639 = arith.mulf %7, %638 : vector<2x128xf32>
    %640 = arith.addf %632, %639 : vector<2x128xf32>
    %c23_172 = arith.constant 23 : index
    %641 = memref.load %arg3[%c23_172] : memref<32xf32, #tpu.memory_space<smem>>
    %642 = vector.broadcast %641 : f32 to vector<2x128xf32>
    %643 = arith.mulf %7, %642 : vector<2x128xf32>
    %644 = arith.addf %636, %643 : vector<2x128xf32>
    %c1_173 = arith.constant 1 : index
    %645 = memref.load %arg5[%c1_173] : memref<12xf32, #tpu.memory_space<smem>>
    %646 = vector.broadcast %645 : f32 to vector<2x128xf32>
    %647 = arith.addf %640, %646 : vector<2x128xf32>
    %c5_174 = arith.constant 5 : index
    %648 = memref.load %arg5[%c5_174] : memref<12xf32, #tpu.memory_space<smem>>
    %649 = vector.broadcast %648 : f32 to vector<2x128xf32>
    %650 = arith.addf %644, %649 : vector<2x128xf32>
    %651 = math.tanh %647 : vector<2x128xf32>
    %cst_175 = arith.constant 5.000000e-01 : f32
    %652 = vector.broadcast %cst_175 : f32 to vector<2x128xf32>
    %653 = arith.mulf %652, %651 : vector<2x128xf32>
    %cst_176 = arith.constant 5.000000e-01 : f32
    %654 = vector.broadcast %cst_176 : f32 to vector<2x128xf32>
    %655 = arith.addf %653, %654 : vector<2x128xf32>
    %656 = math.tanh %650 : vector<2x128xf32>
    %cst_177 = arith.constant 5.000000e-01 : f32
    %657 = vector.broadcast %cst_177 : f32 to vector<2x128xf32>
    %658 = arith.mulf %657, %656 : vector<2x128xf32>
    %cst_178 = arith.constant 5.000000e-01 : f32
    %659 = vector.broadcast %cst_178 : f32 to vector<2x128xf32>
    %660 = arith.addf %658, %659 : vector<2x128xf32>
    %661 = arith.mulf %660, %3 : vector<2x128xf32>
    %c8_179 = arith.constant 8 : index
    %662 = memref.load %arg2[%c8_179] : memref<48xf32, #tpu.memory_space<smem>>
    %663 = vector.broadcast %662 : f32 to vector<2x128xf32>
    %664 = arith.mulf %497, %663 : vector<2x128xf32>
    %c24_180 = arith.constant 24 : index
    %665 = memref.load %arg2[%c24_180] : memref<48xf32, #tpu.memory_space<smem>>
    %666 = vector.broadcast %665 : f32 to vector<2x128xf32>
    %667 = arith.mulf %497, %666 : vector<2x128xf32>
    %c9_181 = arith.constant 9 : index
    %668 = memref.load %arg2[%c9_181] : memref<48xf32, #tpu.memory_space<smem>>
    %669 = vector.broadcast %668 : f32 to vector<2x128xf32>
    %670 = arith.mulf %499, %669 : vector<2x128xf32>
    %671 = arith.addf %664, %670 : vector<2x128xf32>
    %c25_182 = arith.constant 25 : index
    %672 = memref.load %arg2[%c25_182] : memref<48xf32, #tpu.memory_space<smem>>
    %673 = vector.broadcast %672 : f32 to vector<2x128xf32>
    %674 = arith.mulf %499, %673 : vector<2x128xf32>
    %675 = arith.addf %667, %674 : vector<2x128xf32>
    %c10_183 = arith.constant 10 : index
    %676 = memref.load %arg2[%c10_183] : memref<48xf32, #tpu.memory_space<smem>>
    %677 = vector.broadcast %676 : f32 to vector<2x128xf32>
    %678 = arith.mulf %501, %677 : vector<2x128xf32>
    %679 = arith.addf %671, %678 : vector<2x128xf32>
    %c26_184 = arith.constant 26 : index
    %680 = memref.load %arg2[%c26_184] : memref<48xf32, #tpu.memory_space<smem>>
    %681 = vector.broadcast %680 : f32 to vector<2x128xf32>
    %682 = arith.mulf %501, %681 : vector<2x128xf32>
    %683 = arith.addf %675, %682 : vector<2x128xf32>
    %c11_185 = arith.constant 11 : index
    %684 = memref.load %arg2[%c11_185] : memref<48xf32, #tpu.memory_space<smem>>
    %685 = vector.broadcast %684 : f32 to vector<2x128xf32>
    %686 = arith.mulf %503, %685 : vector<2x128xf32>
    %687 = arith.addf %679, %686 : vector<2x128xf32>
    %c27_186 = arith.constant 27 : index
    %688 = memref.load %arg2[%c27_186] : memref<48xf32, #tpu.memory_space<smem>>
    %689 = vector.broadcast %688 : f32 to vector<2x128xf32>
    %690 = arith.mulf %503, %689 : vector<2x128xf32>
    %691 = arith.addf %683, %690 : vector<2x128xf32>
    %c8_187 = arith.constant 8 : index
    %692 = memref.load %arg3[%c8_187] : memref<32xf32, #tpu.memory_space<smem>>
    %693 = vector.broadcast %692 : f32 to vector<2x128xf32>
    %694 = arith.mulf %1, %693 : vector<2x128xf32>
    %695 = arith.addf %687, %694 : vector<2x128xf32>
    %c24_188 = arith.constant 24 : index
    %696 = memref.load %arg3[%c24_188] : memref<32xf32, #tpu.memory_space<smem>>
    %697 = vector.broadcast %696 : f32 to vector<2x128xf32>
    %698 = arith.mulf %1, %697 : vector<2x128xf32>
    %699 = arith.addf %691, %698 : vector<2x128xf32>
    %c9_189 = arith.constant 9 : index
    %700 = memref.load %arg3[%c9_189] : memref<32xf32, #tpu.memory_space<smem>>
    %701 = vector.broadcast %700 : f32 to vector<2x128xf32>
    %702 = arith.mulf %3, %701 : vector<2x128xf32>
    %703 = arith.addf %695, %702 : vector<2x128xf32>
    %c25_190 = arith.constant 25 : index
    %704 = memref.load %arg3[%c25_190] : memref<32xf32, #tpu.memory_space<smem>>
    %705 = vector.broadcast %704 : f32 to vector<2x128xf32>
    %706 = arith.mulf %3, %705 : vector<2x128xf32>
    %707 = arith.addf %699, %706 : vector<2x128xf32>
    %c10_191 = arith.constant 10 : index
    %708 = memref.load %arg3[%c10_191] : memref<32xf32, #tpu.memory_space<smem>>
    %709 = vector.broadcast %708 : f32 to vector<2x128xf32>
    %710 = arith.mulf %5, %709 : vector<2x128xf32>
    %711 = arith.addf %703, %710 : vector<2x128xf32>
    %c26_192 = arith.constant 26 : index
    %712 = memref.load %arg3[%c26_192] : memref<32xf32, #tpu.memory_space<smem>>
    %713 = vector.broadcast %712 : f32 to vector<2x128xf32>
    %714 = arith.mulf %5, %713 : vector<2x128xf32>
    %715 = arith.addf %707, %714 : vector<2x128xf32>
    %c11_193 = arith.constant 11 : index
    %716 = memref.load %arg3[%c11_193] : memref<32xf32, #tpu.memory_space<smem>>
    %717 = vector.broadcast %716 : f32 to vector<2x128xf32>
    %718 = arith.mulf %7, %717 : vector<2x128xf32>
    %719 = arith.addf %711, %718 : vector<2x128xf32>
    %c27_194 = arith.constant 27 : index
    %720 = memref.load %arg3[%c27_194] : memref<32xf32, #tpu.memory_space<smem>>
    %721 = vector.broadcast %720 : f32 to vector<2x128xf32>
    %722 = arith.mulf %7, %721 : vector<2x128xf32>
    %723 = arith.addf %715, %722 : vector<2x128xf32>
    %c2_195 = arith.constant 2 : index
    %724 = memref.load %arg5[%c2_195] : memref<12xf32, #tpu.memory_space<smem>>
    %725 = vector.broadcast %724 : f32 to vector<2x128xf32>
    %726 = arith.addf %719, %725 : vector<2x128xf32>
    %c6_196 = arith.constant 6 : index
    %727 = memref.load %arg5[%c6_196] : memref<12xf32, #tpu.memory_space<smem>>
    %728 = vector.broadcast %727 : f32 to vector<2x128xf32>
    %729 = arith.addf %723, %728 : vector<2x128xf32>
    %730 = math.tanh %726 : vector<2x128xf32>
    %cst_197 = arith.constant 5.000000e-01 : f32
    %731 = vector.broadcast %cst_197 : f32 to vector<2x128xf32>
    %732 = arith.mulf %731, %730 : vector<2x128xf32>
    %cst_198 = arith.constant 5.000000e-01 : f32
    %733 = vector.broadcast %cst_198 : f32 to vector<2x128xf32>
    %734 = arith.addf %732, %733 : vector<2x128xf32>
    %735 = math.tanh %729 : vector<2x128xf32>
    %cst_199 = arith.constant 5.000000e-01 : f32
    %736 = vector.broadcast %cst_199 : f32 to vector<2x128xf32>
    %737 = arith.mulf %736, %735 : vector<2x128xf32>
    %cst_200 = arith.constant 5.000000e-01 : f32
    %738 = vector.broadcast %cst_200 : f32 to vector<2x128xf32>
    %739 = arith.addf %737, %738 : vector<2x128xf32>
    %740 = arith.mulf %739, %5 : vector<2x128xf32>
    %c12_201 = arith.constant 12 : index
    %741 = memref.load %arg2[%c12_201] : memref<48xf32, #tpu.memory_space<smem>>
    %742 = vector.broadcast %741 : f32 to vector<2x128xf32>
    %743 = arith.mulf %497, %742 : vector<2x128xf32>
    %c28_202 = arith.constant 28 : index
    %744 = memref.load %arg2[%c28_202] : memref<48xf32, #tpu.memory_space<smem>>
    %745 = vector.broadcast %744 : f32 to vector<2x128xf32>
    %746 = arith.mulf %497, %745 : vector<2x128xf32>
    %c13_203 = arith.constant 13 : index
    %747 = memref.load %arg2[%c13_203] : memref<48xf32, #tpu.memory_space<smem>>
    %748 = vector.broadcast %747 : f32 to vector<2x128xf32>
    %749 = arith.mulf %499, %748 : vector<2x128xf32>
    %750 = arith.addf %743, %749 : vector<2x128xf32>
    %c29_204 = arith.constant 29 : index
    %751 = memref.load %arg2[%c29_204] : memref<48xf32, #tpu.memory_space<smem>>
    %752 = vector.broadcast %751 : f32 to vector<2x128xf32>
    %753 = arith.mulf %499, %752 : vector<2x128xf32>
    %754 = arith.addf %746, %753 : vector<2x128xf32>
    %c14_205 = arith.constant 14 : index
    %755 = memref.load %arg2[%c14_205] : memref<48xf32, #tpu.memory_space<smem>>
    %756 = vector.broadcast %755 : f32 to vector<2x128xf32>
    %757 = arith.mulf %501, %756 : vector<2x128xf32>
    %758 = arith.addf %750, %757 : vector<2x128xf32>
    %c30_206 = arith.constant 30 : index
    %759 = memref.load %arg2[%c30_206] : memref<48xf32, #tpu.memory_space<smem>>
    %760 = vector.broadcast %759 : f32 to vector<2x128xf32>
    %761 = arith.mulf %501, %760 : vector<2x128xf32>
    %762 = arith.addf %754, %761 : vector<2x128xf32>
    %c15_207 = arith.constant 15 : index
    %763 = memref.load %arg2[%c15_207] : memref<48xf32, #tpu.memory_space<smem>>
    %764 = vector.broadcast %763 : f32 to vector<2x128xf32>
    %765 = arith.mulf %503, %764 : vector<2x128xf32>
    %766 = arith.addf %758, %765 : vector<2x128xf32>
    %c31_208 = arith.constant 31 : index
    %767 = memref.load %arg2[%c31_208] : memref<48xf32, #tpu.memory_space<smem>>
    %768 = vector.broadcast %767 : f32 to vector<2x128xf32>
    %769 = arith.mulf %503, %768 : vector<2x128xf32>
    %770 = arith.addf %762, %769 : vector<2x128xf32>
    %c12_209 = arith.constant 12 : index
    %771 = memref.load %arg3[%c12_209] : memref<32xf32, #tpu.memory_space<smem>>
    %772 = vector.broadcast %771 : f32 to vector<2x128xf32>
    %773 = arith.mulf %1, %772 : vector<2x128xf32>
    %774 = arith.addf %766, %773 : vector<2x128xf32>
    %c28_210 = arith.constant 28 : index
    %775 = memref.load %arg3[%c28_210] : memref<32xf32, #tpu.memory_space<smem>>
    %776 = vector.broadcast %775 : f32 to vector<2x128xf32>
    %777 = arith.mulf %1, %776 : vector<2x128xf32>
    %778 = arith.addf %770, %777 : vector<2x128xf32>
    %c13_211 = arith.constant 13 : index
    %779 = memref.load %arg3[%c13_211] : memref<32xf32, #tpu.memory_space<smem>>
    %780 = vector.broadcast %779 : f32 to vector<2x128xf32>
    %781 = arith.mulf %3, %780 : vector<2x128xf32>
    %782 = arith.addf %774, %781 : vector<2x128xf32>
    %c29_212 = arith.constant 29 : index
    %783 = memref.load %arg3[%c29_212] : memref<32xf32, #tpu.memory_space<smem>>
    %784 = vector.broadcast %783 : f32 to vector<2x128xf32>
    %785 = arith.mulf %3, %784 : vector<2x128xf32>
    %786 = arith.addf %778, %785 : vector<2x128xf32>
    %c14_213 = arith.constant 14 : index
    %787 = memref.load %arg3[%c14_213] : memref<32xf32, #tpu.memory_space<smem>>
    %788 = vector.broadcast %787 : f32 to vector<2x128xf32>
    %789 = arith.mulf %5, %788 : vector<2x128xf32>
    %790 = arith.addf %782, %789 : vector<2x128xf32>
    %c30_214 = arith.constant 30 : index
    %791 = memref.load %arg3[%c30_214] : memref<32xf32, #tpu.memory_space<smem>>
    %792 = vector.broadcast %791 : f32 to vector<2x128xf32>
    %793 = arith.mulf %5, %792 : vector<2x128xf32>
    %794 = arith.addf %786, %793 : vector<2x128xf32>
    %c15_215 = arith.constant 15 : index
    %795 = memref.load %arg3[%c15_215] : memref<32xf32, #tpu.memory_space<smem>>
    %796 = vector.broadcast %795 : f32 to vector<2x128xf32>
    %797 = arith.mulf %7, %796 : vector<2x128xf32>
    %798 = arith.addf %790, %797 : vector<2x128xf32>
    %c31_216 = arith.constant 31 : index
    %799 = memref.load %arg3[%c31_216] : memref<32xf32, #tpu.memory_space<smem>>
    %800 = vector.broadcast %799 : f32 to vector<2x128xf32>
    %801 = arith.mulf %7, %800 : vector<2x128xf32>
    %802 = arith.addf %794, %801 : vector<2x128xf32>
    %c3_217 = arith.constant 3 : index
    %803 = memref.load %arg5[%c3_217] : memref<12xf32, #tpu.memory_space<smem>>
    %804 = vector.broadcast %803 : f32 to vector<2x128xf32>
    %805 = arith.addf %798, %804 : vector<2x128xf32>
    %c7_218 = arith.constant 7 : index
    %806 = memref.load %arg5[%c7_218] : memref<12xf32, #tpu.memory_space<smem>>
    %807 = vector.broadcast %806 : f32 to vector<2x128xf32>
    %808 = arith.addf %802, %807 : vector<2x128xf32>
    %809 = math.tanh %805 : vector<2x128xf32>
    %cst_219 = arith.constant 5.000000e-01 : f32
    %810 = vector.broadcast %cst_219 : f32 to vector<2x128xf32>
    %811 = arith.mulf %810, %809 : vector<2x128xf32>
    %cst_220 = arith.constant 5.000000e-01 : f32
    %812 = vector.broadcast %cst_220 : f32 to vector<2x128xf32>
    %813 = arith.addf %811, %812 : vector<2x128xf32>
    %814 = math.tanh %808 : vector<2x128xf32>
    %cst_221 = arith.constant 5.000000e-01 : f32
    %815 = vector.broadcast %cst_221 : f32 to vector<2x128xf32>
    %816 = arith.mulf %815, %814 : vector<2x128xf32>
    %cst_222 = arith.constant 5.000000e-01 : f32
    %817 = vector.broadcast %cst_222 : f32 to vector<2x128xf32>
    %818 = arith.addf %816, %817 : vector<2x128xf32>
    %819 = arith.mulf %818, %7 : vector<2x128xf32>
    %c32_223 = arith.constant 32 : index
    %820 = memref.load %arg2[%c32_223] : memref<48xf32, #tpu.memory_space<smem>>
    %821 = vector.broadcast %820 : f32 to vector<2x128xf32>
    %822 = arith.mulf %497, %821 : vector<2x128xf32>
    %c33_224 = arith.constant 33 : index
    %823 = memref.load %arg2[%c33_224] : memref<48xf32, #tpu.memory_space<smem>>
    %824 = vector.broadcast %823 : f32 to vector<2x128xf32>
    %825 = arith.mulf %499, %824 : vector<2x128xf32>
    %826 = arith.addf %822, %825 : vector<2x128xf32>
    %c34_225 = arith.constant 34 : index
    %827 = memref.load %arg2[%c34_225] : memref<48xf32, #tpu.memory_space<smem>>
    %828 = vector.broadcast %827 : f32 to vector<2x128xf32>
    %829 = arith.mulf %501, %828 : vector<2x128xf32>
    %830 = arith.addf %826, %829 : vector<2x128xf32>
    %c35_226 = arith.constant 35 : index
    %831 = memref.load %arg2[%c35_226] : memref<48xf32, #tpu.memory_space<smem>>
    %832 = vector.broadcast %831 : f32 to vector<2x128xf32>
    %833 = arith.mulf %503, %832 : vector<2x128xf32>
    %834 = arith.addf %830, %833 : vector<2x128xf32>
    %c0_227 = arith.constant 0 : index
    %835 = memref.load %arg4[%c0_227] : memref<16xf32, #tpu.memory_space<smem>>
    %836 = vector.broadcast %835 : f32 to vector<2x128xf32>
    %837 = arith.mulf %582, %836 : vector<2x128xf32>
    %838 = arith.addf %834, %837 : vector<2x128xf32>
    %c1_228 = arith.constant 1 : index
    %839 = memref.load %arg4[%c1_228] : memref<16xf32, #tpu.memory_space<smem>>
    %840 = vector.broadcast %839 : f32 to vector<2x128xf32>
    %841 = arith.mulf %661, %840 : vector<2x128xf32>
    %842 = arith.addf %838, %841 : vector<2x128xf32>
    %c2_229 = arith.constant 2 : index
    %843 = memref.load %arg4[%c2_229] : memref<16xf32, #tpu.memory_space<smem>>
    %844 = vector.broadcast %843 : f32 to vector<2x128xf32>
    %845 = arith.mulf %740, %844 : vector<2x128xf32>
    %846 = arith.addf %842, %845 : vector<2x128xf32>
    %c3_230 = arith.constant 3 : index
    %847 = memref.load %arg4[%c3_230] : memref<16xf32, #tpu.memory_space<smem>>
    %848 = vector.broadcast %847 : f32 to vector<2x128xf32>
    %849 = arith.mulf %819, %848 : vector<2x128xf32>
    %850 = arith.addf %846, %849 : vector<2x128xf32>
    %c8_231 = arith.constant 8 : index
    %851 = memref.load %arg5[%c8_231] : memref<12xf32, #tpu.memory_space<smem>>
    %852 = vector.broadcast %851 : f32 to vector<2x128xf32>
    %853 = arith.addf %850, %852 : vector<2x128xf32>
    %854 = math.tanh %853 : vector<2x128xf32>
    %855 = arith.subf %854, %1 : vector<2x128xf32>
    %856 = arith.mulf %576, %855 : vector<2x128xf32>
    %857 = arith.addf %1, %856 : vector<2x128xf32>
    %c1_232 = arith.constant 1 : index
    %c0_233 = arith.constant 0 : index
    %c0_234 = arith.constant 0 : index
    %c0_235 = arith.constant 0 : index
    %858 = vector.load %arg8[%c1_232, %c0_233, %c0_234, %c0_235] : memref<2x4x2x128xf32, #tpu.memory_space<vmem>>, vector<1x1x2x128xf32>
    %859 = vector.shape_cast %858 : vector<1x1x2x128xf32> to vector<2x128xf32>
    %860 = vector.shape_cast %857 : vector<2x128xf32> to vector<1x1x2x128xf32>
    tpu.vector_store %arg8[%c1_232, %c0_233, %c0_234, %c0_235], %860 {strides = array<i32>} : memref<2x4x2x128xf32, #tpu.memory_space<vmem>>, vector<1x1x2x128xf32>,
    %c36_236 = arith.constant 36 : index
    %861 = memref.load %arg2[%c36_236] : memref<48xf32, #tpu.memory_space<smem>>
    %862 = vector.broadcast %861 : f32 to vector<2x128xf32>
    %863 = arith.mulf %497, %862 : vector<2x128xf32>
    %c37_237 = arith.constant 37 : index
    %864 = memref.load %arg2[%c37_237] : memref<48xf32, #tpu.memory_space<smem>>
    %865 = vector.broadcast %864 : f32 to vector<2x128xf32>
    %866 = arith.mulf %499, %865 : vector<2x128xf32>
    %867 = arith.addf %863, %866 : vector<2x128xf32>
    %c38_238 = arith.constant 38 : index
    %868 = memref.load %arg2[%c38_238] : memref<48xf32, #tpu.memory_space<smem>>
    %869 = vector.broadcast %868 : f32 to vector<2x128xf32>
    %870 = arith.mulf %501, %869 : vector<2x128xf32>
    %871 = arith.addf %867, %870 : vector<2x128xf32>
    %c39_239 = arith.constant 39 : index
    %872 = memref.load %arg2[%c39_239] : memref<48xf32, #tpu.memory_space<smem>>
    %873 = vector.broadcast %872 : f32 to vector<2x128xf32>
    %874 = arith.mulf %503, %873 : vector<2x128xf32>
    %875 = arith.addf %871, %874 : vector<2x128xf32>
    %c4_240 = arith.constant 4 : index
    %876 = memref.load %arg4[%c4_240] : memref<16xf32, #tpu.memory_space<smem>>
    %877 = vector.broadcast %876 : f32 to vector<2x128xf32>
    %878 = arith.mulf %582, %877 : vector<2x128xf32>
    %879 = arith.addf %875, %878 : vector<2x128xf32>
    %c5_241 = arith.constant 5 : index
    %880 = memref.load %arg4[%c5_241] : memref<16xf32, #tpu.memory_space<smem>>
    %881 = vector.broadcast %880 : f32 to vector<2x128xf32>
    %882 = arith.mulf %661, %881 : vector<2x128xf32>
    %883 = arith.addf %879, %882 : vector<2x128xf32>
    %c6_242 = arith.constant 6 : index
    %884 = memref.load %arg4[%c6_242] : memref<16xf32, #tpu.memory_space<smem>>
    %885 = vector.broadcast %884 : f32 to vector<2x128xf32>
    %886 = arith.mulf %740, %885 : vector<2x128xf32>
    %887 = arith.addf %883, %886 : vector<2x128xf32>
    %c7_243 = arith.constant 7 : index
    %888 = memref.load %arg4[%c7_243] : memref<16xf32, #tpu.memory_space<smem>>
    %889 = vector.broadcast %888 : f32 to vector<2x128xf32>
    %890 = arith.mulf %819, %889 : vector<2x128xf32>
    %891 = arith.addf %887, %890 : vector<2x128xf32>
    %c9_244 = arith.constant 9 : index
    %892 = memref.load %arg5[%c9_244] : memref<12xf32, #tpu.memory_space<smem>>
    %893 = vector.broadcast %892 : f32 to vector<2x128xf32>
    %894 = arith.addf %891, %893 : vector<2x128xf32>
    %895 = math.tanh %894 : vector<2x128xf32>
    %896 = arith.subf %895, %3 : vector<2x128xf32>
    %897 = arith.mulf %655, %896 : vector<2x128xf32>
    %898 = arith.addf %3, %897 : vector<2x128xf32>
    %c1_245 = arith.constant 1 : index
    %c1_246 = arith.constant 1 : index
    %c0_247 = arith.constant 0 : index
    %c0_248 = arith.constant 0 : index
    %899 = vector.load %arg8[%c1_245, %c1_246, %c0_247, %c0_248] : memref<2x4x2x128xf32, #tpu.memory_space<vmem>>, vector<1x1x2x128xf32>
    %900 = vector.shape_cast %899 : vector<1x1x2x128xf32> to vector<2x128xf32>
    %901 = vector.shape_cast %898 : vector<2x128xf32> to vector<1x1x2x128xf32>
    tpu.vector_store %arg8[%c1_245, %c1_246, %c0_247, %c0_248], %901 {strides = array<i32>} : memref<2x4x2x128xf32, #tpu.memory_space<vmem>>, vector<1x1x2x128xf32>,
    %c40_249 = arith.constant 40 : index
    %902 = memref.load %arg2[%c40_249] : memref<48xf32, #tpu.memory_space<smem>>
    %903 = vector.broadcast %902 : f32 to vector<2x128xf32>
    %904 = arith.mulf %497, %903 : vector<2x128xf32>
    %c41_250 = arith.constant 41 : index
    %905 = memref.load %arg2[%c41_250] : memref<48xf32, #tpu.memory_space<smem>>
    %906 = vector.broadcast %905 : f32 to vector<2x128xf32>
    %907 = arith.mulf %499, %906 : vector<2x128xf32>
    %908 = arith.addf %904, %907 : vector<2x128xf32>
    %c42_251 = arith.constant 42 : index
    %909 = memref.load %arg2[%c42_251] : memref<48xf32, #tpu.memory_space<smem>>
    %910 = vector.broadcast %909 : f32 to vector<2x128xf32>
    %911 = arith.mulf %501, %910 : vector<2x128xf32>
    %912 = arith.addf %908, %911 : vector<2x128xf32>
    %c43_252 = arith.constant 43 : index
    %913 = memref.load %arg2[%c43_252] : memref<48xf32, #tpu.memory_space<smem>>
    %914 = vector.broadcast %913 : f32 to vector<2x128xf32>
    %915 = arith.mulf %503, %914 : vector<2x128xf32>
    %916 = arith.addf %912, %915 : vector<2x128xf32>
    %c8_253 = arith.constant 8 : index
    %917 = memref.load %arg4[%c8_253] : memref<16xf32, #tpu.memory_space<smem>>
    %918 = vector.broadcast %917 : f32 to vector<2x128xf32>
    %919 = arith.mulf %582, %918 : vector<2x128xf32>
    %920 = arith.addf %916, %919 : vector<2x128xf32>
    %c9_254 = arith.constant 9 : index
    %921 = memref.load %arg4[%c9_254] : memref<16xf32, #tpu.memory_space<smem>>
    %922 = vector.broadcast %921 : f32 to vector<2x128xf32>
    %923 = arith.mulf %661, %922 : vector<2x128xf32>
    %924 = arith.addf %920, %923 : vector<2x128xf32>
    %c10_255 = arith.constant 10 : index
    %925 = memref.load %arg4[%c10_255] : memref<16xf32, #tpu.memory_space<smem>>
    %926 = vector.broadcast %925 : f32 to vector<2x128xf32>
    %927 = arith.mulf %740, %926 : vector<2x128xf32>
    %928 = arith.addf %924, %927 : vector<2x128xf32>
    %c11_256 = arith.constant 11 : index
    %929 = memref.load %arg4[%c11_256] : memref<16xf32, #tpu.memory_space<smem>>
    %930 = vector.broadcast %929 : f32 to vector<2x128xf32>
    %931 = arith.mulf %819, %930 : vector<2x128xf32>
    %932 = arith.addf %928, %931 : vector<2x128xf32>
    %c10_257 = arith.constant 10 : index
    %933 = memref.load %arg5[%c10_257] : memref<12xf32, #tpu.memory_space<smem>>
    %934 = vector.broadcast %933 : f32 to vector<2x128xf32>
    %935 = arith.addf %932, %934 : vector<2x128xf32>
    %936 = math.tanh %935 : vector<2x128xf32>
    %937 = arith.subf %936, %5 : vector<2x128xf32>
    %938 = arith.mulf %734, %937 : vector<2x128xf32>
    %939 = arith.addf %5, %938 : vector<2x128xf32>
    %c1_258 = arith.constant 1 : index
    %c2_259 = arith.constant 2 : index
    %c0_260 = arith.constant 0 : index
    %c0_261 = arith.constant 0 : index
    %940 = vector.load %arg8[%c1_258, %c2_259, %c0_260, %c0_261] : memref<2x4x2x128xf32, #tpu.memory_space<vmem>>, vector<1x1x2x128xf32>
    %941 = vector.shape_cast %940 : vector<1x1x2x128xf32> to vector<2x128xf32>
    %942 = vector.shape_cast %939 : vector<2x128xf32> to vector<1x1x2x128xf32>
    tpu.vector_store %arg8[%c1_258, %c2_259, %c0_260, %c0_261], %942 {strides = array<i32>} : memref<2x4x2x128xf32, #tpu.memory_space<vmem>>, vector<1x1x2x128xf32>,
    %c44_262 = arith.constant 44 : index
    %943 = memref.load %arg2[%c44_262] : memref<48xf32, #tpu.memory_space<smem>>
    %944 = vector.broadcast %943 : f32 to vector<2x128xf32>
    %945 = arith.mulf %497, %944 : vector<2x128xf32>
    %c45_263 = arith.constant 45 : index
    %946 = memref.load %arg2[%c45_263] : memref<48xf32, #tpu.memory_space<smem>>
    %947 = vector.broadcast %946 : f32 to vector<2x128xf32>
    %948 = arith.mulf %499, %947 : vector<2x128xf32>
    %949 = arith.addf %945, %948 : vector<2x128xf32>
    %c46_264 = arith.constant 46 : index
    %950 = memref.load %arg2[%c46_264] : memref<48xf32, #tpu.memory_space<smem>>
    %951 = vector.broadcast %950 : f32 to vector<2x128xf32>
    %952 = arith.mulf %501, %951 : vector<2x128xf32>
    %953 = arith.addf %949, %952 : vector<2x128xf32>
    %c47_265 = arith.constant 47 : index
    %954 = memref.load %arg2[%c47_265] : memref<48xf32, #tpu.memory_space<smem>>
    %955 = vector.broadcast %954 : f32 to vector<2x128xf32>
    %956 = arith.mulf %503, %955 : vector<2x128xf32>
    %957 = arith.addf %953, %956 : vector<2x128xf32>
    %c12_266 = arith.constant 12 : index
    %958 = memref.load %arg4[%c12_266] : memref<16xf32, #tpu.memory_space<smem>>
    %959 = vector.broadcast %958 : f32 to vector<2x128xf32>
    %960 = arith.mulf %582, %959 : vector<2x128xf32>
    %961 = arith.addf %957, %960 : vector<2x128xf32>
    %c13_267 = arith.constant 13 : index
    %962 = memref.load %arg4[%c13_267] : memref<16xf32, #tpu.memory_space<smem>>
    %963 = vector.broadcast %962 : f32 to vector<2x128xf32>
    %964 = arith.mulf %661, %963 : vector<2x128xf32>
    %965 = arith.addf %961, %964 : vector<2x128xf32>
    %c14_268 = arith.constant 14 : index
    %966 = memref.load %arg4[%c14_268] : memref<16xf32, #tpu.memory_space<smem>>
    %967 = vector.broadcast %966 : f32 to vector<2x128xf32>
    %968 = arith.mulf %740, %967 : vector<2x128xf32>
    %969 = arith.addf %965, %968 : vector<2x128xf32>
    %c15_269 = arith.constant 15 : index
    %970 = memref.load %arg4[%c15_269] : memref<16xf32, #tpu.memory_space<smem>>
    %971 = vector.broadcast %970 : f32 to vector<2x128xf32>
    %972 = arith.mulf %819, %971 : vector<2x128xf32>
    %973 = arith.addf %969, %972 : vector<2x128xf32>
    %c11_270 = arith.constant 11 : index
    %974 = memref.load %arg5[%c11_270] : memref<12xf32, #tpu.memory_space<smem>>
    %975 = vector.broadcast %974 : f32 to vector<2x128xf32>
    %976 = arith.addf %973, %975 : vector<2x128xf32>
    %977 = math.tanh %976 : vector<2x128xf32>
    %978 = arith.subf %977, %7 : vector<2x128xf32>
    %979 = arith.mulf %813, %978 : vector<2x128xf32>
    %980 = arith.addf %7, %979 : vector<2x128xf32>
    %c1_271 = arith.constant 1 : index
    %c3_272 = arith.constant 3 : index
    %c0_273 = arith.constant 0 : index
    %c0_274 = arith.constant 0 : index
    %981 = vector.load %arg8[%c1_271, %c3_272, %c0_273, %c0_274] : memref<2x4x2x128xf32, #tpu.memory_space<vmem>>, vector<1x1x2x128xf32>
    %982 = vector.shape_cast %981 : vector<1x1x2x128xf32> to vector<2x128xf32>
    %983 = vector.shape_cast %980 : vector<2x128xf32> to vector<1x1x2x128xf32>
    tpu.vector_store %arg8[%c1_271, %c3_272, %c0_273, %c0_274], %983 {strides = array<i32>} : memref<2x4x2x128xf32, #tpu.memory_space<vmem>>, vector<1x1x2x128xf32>,
    return
  }
  func.func @transform_0(%arg0: i32, %arg1: i32) -> i32 {
    %c0_i32 = arith.constant 0 : i32
    %c0_i32_0 = arith.constant 0 : i32
    return %c0_i32 : i32
  }
  func.func @transform_1(%arg0: i32, %arg1: i32) -> i32 {
    %c0_i32 = arith.constant 0 : i32
    %c0_i32_0 = arith.constant 0 : i32
    return %c0_i32 : i32
  }
  func.func @transform_2(%arg0: i32, %arg1: i32) -> i32 {
    %c0_i32 = arith.constant 0 : i32
    %c0_i32_0 = arith.constant 0 : i32
    return %c0_i32 : i32
  }
  func.func @transform_3(%arg0: i32, %arg1: i32) -> i32 {
    %c0_i32 = arith.constant 0 : i32
    %c0_i32_0 = arith.constant 0 : i32
    return %c0_i32 : i32
  }
  func.func @transform_4(%arg0: i32, %arg1: i32) -> (i32, i32, i32, i32) {
    %c0_i32 = arith.constant 0 : i32
    %c0_i32_0 = arith.constant 0 : i32
    %c0_i32_1 = arith.constant 0 : i32
    return %arg1, %c0_i32, %arg0, %c0_i32_0 : i32, i32, i32, i32
  }
  func.func @transform_5(%arg0: i32, %arg1: i32) -> (i32, i32, i32) {
    %c0_i32 = arith.constant 0 : i32
    %c0_i32_0 = arith.constant 0 : i32
    %c0_i32_1 = arith.constant 0 : i32
    return %c0_i32, %arg0, %c0_i32_0 : i32, i32, i32
  }
  func.func @transform_6(%arg0: i32, %arg1: i32) -> (i32, i32, i32, i32) {
    %c0_i32 = arith.constant 0 : i32
    %c0_i32_0 = arith.constant 0 : i32
    %c0_i32_1 = arith.constant 0 : i32
    return %arg1, %c0_i32, %arg0, %c0_i32_0 : i32, i32, i32, i32
  }
}

</mosaic_0001>

<bundles_post_ra>
// kernel: graph_gru_forward.1
= control target key start
LH: loop header
LB: loop body
LE: loop exit
PB: predicated region body
PF: predicated region fallthrough
CT: control target
= control target key end

     0   :  { %s2407_s0 = inlined_call_operand.vmem [shape: f32[48], index: 0, kind: input, shape index: {}]   ;;  %s2408_s1 = inlined_call_operand.vmem [shape: f32[32], index: 1, kind: input, shape index: {}]   ;;  %s2409_s2 = inlined_call_operand.vmem [shape: f32[16], index: 2, kind: input, shape index: {}]   ;;  %s2410_s3 = inlined_call_operand.vmem [shape: f32[12], index: 3, kind: input, shape index: {}]   ;;  %s2411_s4 = inlined_call_operand.vmem [shape: f32[2,4,2,128], index: 4, kind: input, shape index: {}]   ;;  %s2412_s5 = inlined_call_operand.vmem [shape: f32[4,2,128], index: 5, kind: input, shape index: {}]   ;;  %s2413_s6 = inlined_call_operand.vmem [shape: f32[2,4,2,128], index: 6, kind: output, shape index: {}]  }
   0x1   :  { %2468 = sst [smem:[#allocation29_spill]] %s2412_s5 }
   0x2   :  { %2469 = sst [smem:[#allocation30_spill]] %s2413_s6 }
   0x3   :  { %11 = vsyncpa [#allocation3], 0 }
   0x4   :  { %12 = vsyncpa [#allocation5], 0  ;;  %s30_s23 = sshll.u32 %s2408_s1, 4  ;;  %s31_s23 = int_to_ptr.vmem [resolvable:$true] %s30_s23 }
   0x5   :  { %13 = vsyncpa [#allocation8], 0  ;;  %s20_s26 = sshll.u32 %s2407_s0, 4  ;;  %s1304_s27 = scalar_lea.vmem %s31_s23, 16  ;;  %s21_s26 = int_to_ptr.vmem [resolvable:$true] %s20_s26 }
   0x6   :  { %p1305_p0 = scmp.ne.s32.totalorder %s31_s23, %s1304_s27  ;;  %p1309_p1 = scmp.lt.s32.totalorder %s31_s23, %s31_s23 }
   0x7   :  { %p1310_p2 = scmp.lt.s32.totalorder %s1304_s27, %s1304_s27 }
   0x9   :  { %p1311_p3 = por %p1310_p2, %p1309_p1 }
   0xb   :  { %p1312_p4 = pnand %p1311_p3, %p1305_p0 }
   0xd   :  { %1315 = shalt.err (!%p1312_p4)
}
   0xe   :  { %s1358_s28 = smov [#allocation4]   ;;  %s1316_s29 = scalar_lea.vmem %s21_s26, 16 }
   0xf   :  { %33 = dma.vmem_to_smem %s31_s23, 16, %s1358_s28, [#allocation5]  }
  0x10   :  { %p1317_p5 = scmp.ne.s32.totalorder %s21_s26, %s1316_s29  ;;  %p1321_p6 = scmp.lt.s32.totalorder %s21_s26, %s21_s26 }
  0x11   :  { %p1322_p7 = scmp.lt.s32.totalorder %s1316_s29, %s1316_s29 }
  0x13   :  { %p1323_p8 = por %p1322_p7, %p1321_p6 }
  0x15   :  { %p1324_p9 = pnand %p1323_p8, %p1317_p5 }
  0x17   :  { %1327 = shalt.err (!%p1324_p9)
}
  0x18   :  { %s1359_s1 = smov [#allocation2]   ;;  %s40_s7 = sshll.u32 %s2409_s2, 4  ;;  %s41_s7 = int_to_ptr.vmem [resolvable:$true] %s40_s7 }
  0x19   :  { %23 = dma.vmem_to_smem %s21_s26, 16, %s1359_s1, [#allocation3]  }
  0x1a   :  { %s50_s10 = sshll.u32 %s2410_s3, 4  ;;  %s1328_s11 = scalar_lea.vmem %s41_s7, 16  ;;  %s51_s10 = int_to_ptr.vmem [resolvable:$true] %s50_s10 }
  0x1b   :  { %p1329_p10 = scmp.ne.s32.totalorder %s41_s7, %s1328_s11  ;;  %p1333_p11 = scmp.lt.s32.totalorder %s41_s7, %s41_s7 }
  0x1c   :  { %p1334_p12 = scmp.lt.s32.totalorder %s1328_s11, %s1328_s11 }
  0x1e   :  { %p1335_p13 = por %p1334_p12, %p1333_p11 }
  0x20   :  { %p1336_p0 = pnand %p1335_p13, %p1329_p10 }
  0x22   :  { %1339 = shalt.err (!%p1336_p0)
}
  0x23   :  { %s1360_s12 = smov [#allocation6]   ;;  %s1340_s13 = scalar_lea.vmem %s51_s10, 16 }
  0x24   :  { %43 = dma.vmem_to_smem %s41_s7, 16, %s1360_s12, [#allocation5]  }
  0x25   :  { %p1341_p1 = scmp.ne.s32.totalorder %s51_s10, %s1340_s13  ;;  %p1345_p2 = scmp.lt.s32.totalorder %s51_s10, %s51_s10 }
  0x26   :  { %p1346_p3 = scmp.lt.s32.totalorder %s1340_s13, %s1340_s13 }
  0x28   :  { %p1347_p4 = por %p1346_p3, %p1345_p2 }
  0x2a   :  { %p1348_p5 = pnand %p1347_p4, %p1341_p1 }
  0x2c   :  { %1351 = shalt.err (!%p1348_p5)
}
  0x2d   :  { %s1361_s2 = smov [#allocation7]  }
  0x2e   :  { %53 = dma.vmem_to_smem %s51_s10, 16, %s1361_s2, [#allocation8]  }
  0x2f   :  { %1352 = dma.done.wait [#allocation3], 16  }
  0x30   :  { %1353 = vsyncadd [#allocation3], 4294967280 }
  0x31   :  { %1354 = dma.done.wait [#allocation5], 32  }
  0x32   :  { %1355 = vsyncadd [#allocation5], 4294967264 }
  0x33   :  { %1356 = dma.done.wait [#allocation8], 16  }
  0x34   :  { %1357 = vsyncadd [#allocation8], 4294967280 }
  0x35   :  { %70 = sfence }
  0x36   :  { %s1409_s3 = sld [smem:[#allocation2]]  ;;  %v1422_v0 = vld [vmem:[%s2411_s4] sm:$0x3]  ;;  %v1432_v2 = vld [vmem:[%s2411_s4 + $0x2] sm:$0x3] }
  0x37   :  { %s1411_s14 = sld [smem:[#allocation2 + $0x10]]  ;;  %v1445_v7 = vld [vmem:[%s2411_s4 + $0x4] sm:$0x3]  ;;  %v1462_v15 = vld [vmem:[%s2411_s4 + $0x8] sm:$0x3] }
  0x38   :  { %s1413_s15 = sld [smem:[#allocation2 + $0x1]]  ;;  %v1467_v16 = vld [vmem:[%s2411_s4 + $0xa] sm:$0x3]  ;;  %v1472_v17 = vld [vmem:[%s2411_s4 + $0x6] sm:$0x3] }
  0x39   :  { %s1415_s16 = sld [smem:[#allocation2 + $0x11]]  ;;  %v1495_v31 = vld [vmem:[%s2411_s4 + $0xc] sm:$0x3]  ;;  %v1500_v32 = vld [vmem:[%s2412_s5] sm:$0x3] }
  0x3a   :  { %s1417_s17 = sld [smem:[#allocation2 + $0x2]]  ;;  %v1519_v43 = vld [vmem:[%s2411_s4 + $0xe] sm:$0x3]  ;;  %v1524_v44 = vld [vmem:[%s2412_s5 + $0x2] sm:$0x3] }
  0x3b   :  { %s1424_s20 = sld [smem:[#allocation2 + $0x12]]  ;;  %v1545_v55 = vld [vmem:[%s2412_s5 + $0x4] sm:$0x3] }
  0x3c   :  { %v86_v1 = vstv %s1409_s3  ;;  %s1427_s21 = sld [smem:[#allocation2 + $0x3]] }
  0x3d   :  { %v87_v3 = vmul.f32 %v86_v1, %v1422_v0  ;;  %v89_v4 = vstv %s1411_s14  ;;  %s1436_s24 = sld [smem:[#allocation2 + $0x13]]  ;;  %v554_v21 = vmul.f32 %v1462_v15, %v86_v1 }
  0x3e   :  { %v90_v5 = vmul.f32 %v89_v4, %v1422_v0  ;;  %v92_v6 = vstv %s1413_s15  ;;  %s1440_s25 = sld [smem:[#allocation4]]  ;;  %v557_v27 = vmul.f32 %v1462_v15, %v89_v4 }
  0x3f   :  { %v93_v8 = vmul.f32 %v1432_v2, %v92_v6  ;;  %v96_v9 = vstv %s1415_s16  ;;  %s1449_s28 = sld [smem:[#allocation4 + $0x10]]  ;;  %v560_v25 = vmul.f32 %v1467_v16, %v92_v6 }
  0x40   :  { %v97_v10 = vmul.f32 %v1432_v2, %v96_v9  ;;  %v100_v11 = vstv %s1417_s17  ;;  %s1453_s29 = sld [smem:[#allocation4 + $0x1]]  ;;  %v564_v28 = vmul.f32 %v1467_v16, %v96_v9 }
  0x41   :  { %v94_v12 = vadd.f32 %v93_v8, %v87_v3  ;;  %v101_v13 = vmul.f32 %v1445_v7, %v100_v11  ;;  %v104_v14 = vstv %s1424_s20  ;;  %s1457_s1 = sld [smem:[#allocation4 + $0x11]]  ;;  %v561_v36 = vadd.f32 %v560_v25, %v554_v21 }
  0x42   :  { %v98_v18 = vadd.f32 %v97_v10, %v90_v5  ;;  %v105_v19 = vmul.f32 %v1445_v7, %v104_v14  ;;  %v108_v20 = vstv %s1427_s21  ;;  %s1476_s11 = sld [smem:[#allocation4 + $0x2]]  ;;  %v568_v37 = vmul.f32 %v1495_v31, %v100_v11  ;;  %v1568_v5 = vld [vmem:[%s2412_s5 + $0x6] sm:$0x3] }
  0x43   :  { %v102_v22 = vadd.f32 %v101_v13, %v94_v12  ;;  %v109_v23 = vmul.f32 %v1472_v17, %v108_v20  ;;  %v112_v24 = vstv %s1436_s24  ;;  %s1481_s12 = sld [smem:[#allocation4 + $0x12]]  ;;  %v565_v39 = vadd.f32 %v564_v28, %v557_v27 }
  0x44   :  { %v116_v26 = vstv %s1440_s25  ;;  %s1485_s13 = sld [smem:[#allocation4 + $0x3]]  ;;  %v106_v29 = vadd.f32 %v105_v19, %v98_v18  ;;  %v113_v30 = vmul.f32 %v1472_v17, %v112_v24  ;;  %v572_v40 = vmul.f32 %v1495_v31, %v104_v14 }
  0x45   :  { %s1490_s2 = sld [smem:[#allocation4 + $0x13]]  ;;  %v120_v33 = vstv %s1449_s28  ;;  %v110_v34 = vadd.f32 %v109_v23, %v102_v22  ;;  %v117_v35 = vmul.f32 %v116_v26, %v1500_v32  ;;  %v569_v48 = vadd.f32 %v568_v37, %v561_v36 }
  0x46   :  { %s1503_s17 = sld [smem:[#allocation7]]  ;;  %v124_v38 = vstv %s1453_s29  ;;  %v114_v41 = vadd.f32 %v113_v30, %v106_v29  ;;  %v121_v42 = vmul.f32 %v120_v33, %v1500_v32  ;;  %v573_v50 = vadd.f32 %v572_v40, %v565_v39 }
  0x47   :  { %s1506_s18 = sld [smem:[#allocation7 + $0x4]]  ;;  %v128_v45 = vstv %s1457_s1  ;;  %v118_v46 = vadd.f32 %v117_v35, %v110_v34  ;;  %v1530_v47 = vmul.f32 %v1524_v44, %v124_v38  ;;  %v576_v51 = vmul.f32 %v1519_v43, %v108_v20 }
  0x48   :  { %s1510_s19 = sld [smem:[#allocation2 + $0x4]]  ;;  %v132_v49 = vstv %s1476_s11  ;;  %v580_v52 = vmul.f32 %v1519_v43, %v112_v24  ;;  %v122_v53 = vadd.f32 %v121_v42, %v114_v41  ;;  %v129_v54 = vmul.f32 %v1524_v44, %v128_v45 }
  0x49   :  { %s1514_s20 = sld [smem:[#allocation2 + $0x14]]  ;;  %v136_v56 = vstv %s1481_s12  ;;  %v126_v57 = vadd.f32 %v1530_v47, %v118_v46  ;;  %v1552_v58 = vmul.f32 %v1545_v55, %v132_v49  ;;  %v577_v61 = vadd.f32 %v576_v51, %v569_v48 }
  0x4a   :  { %s1527_s25 = sld [smem:[#allocation2 + $0x5]]  ;;  %v581_v62 = vadd.f32 %v580_v52, %v573_v50  ;;  %v130_v63 = vadd.f32 %v129_v54, %v122_v53  ;;  %v137_v1 = vmul.f32 %v1545_v55, %v136_v56  ;;  %v140_v3 = vstv %s1485_s13 }
  0x4b   :  { %s1532_s26 = sld [smem:[#allocation2 + $0x15]]  ;;  %v144_v6 = vstv %s1490_s2  ;;  %v134_v9 = vadd.f32 %v1552_v58, %v126_v57  ;;  %v141_v13 = vmul.f32 %v1568_v5, %v140_v3  ;;  %v585_v23 = vadd.f32 %v577_v61, %v117_v35 }
  0x4c   :  { %2470 = sst [smem:[#allocation12_spill]] %s1503_s17  ;;  %v589_v19 = vadd.f32 %v581_v62, %v121_v42  ;;  %v138_v20 = vadd.f32 %v137_v1, %v130_v63  ;;  %v145_v21 = vmul.f32 %v1568_v5, %v144_v6  ;;  %v2414_v37 = vstv %s1503_s17 }
  0x4d   :  { %s1535_s27 = sld [smem:[#allocation2 + $0x6]]  ;;  %v142_v30 = vadd.f32 %v141_v13, %v134_v9  ;;  %v593_v39 = vadd.f32 %v585_v23, %v1530_v47  ;;  %v151_v40 = vstv %s1506_s18 }
  0x4e   :  { %s1540_s28 = sld [smem:[#allocation2 + $0x16]]  ;;  %v161_v10 = vstv %s1510_s19  ;;  %v597_v35 = vadd.f32 %v589_v19, %v129_v54  ;;  %v146_v36 = vadd.f32 %v145_v21, %v138_v20 }
  0x4f   :  { %s1548_s0 = sld [smem:[#allocation2 + $0x7]]  ;;  %v164_v59 = vstv %s1514_s20  ;;  %v162_v24 = vmul.f32 %v161_v10, %v1422_v0  ;;  %v149_v47 = vadd.f32 %v2414_v37, %v142_v30  ;;  %v601_v52 = vadd.f32 %v593_v39, %v1552_v58 }
  0x50   :  { %s1555_s30 = sld [smem:[#allocation2 + $0x17]]  ;;  %v165_v60 = vmul.f32 %v164_v59, %v1422_v0  ;;  %v167_v11 = vstv %s1527_s25  ;;  %v605_v50 = vadd.f32 %v597_v35, %v137_v1  ;;  %v152_v51 = vadd.f32 %v151_v40, %v146_v36 }
  0x51   :  { %s1560_s7 = sld [smem:[#allocation4 + $0x4]]  ;;  %v171_v4 = vstv %s1532_s26  ;;  %v168_v25 = vmul.f32 %v1432_v2, %v167_v11  ;;  %1248 = vtanh.f32 %v149_v47  ;;  %v1659_v3 = vadd.f32 %v601_v52, %v141_v13 }
  0x52   :  { %s1049_s8 = sld [smem:[#allocation4 + $0x14]]  ;;  %v172_v8 = vmul.f32 %v1432_v2, %v171_v4  ;;  %v613_v62 = vadd.f32 %v605_v50, %v145_v21  ;;  %1250 = vtanh.f32 %v152_v51 }
  0x53   :  { %s1574_s11 = sld [smem:[#allocation4 + $0x5]]  ;;  %v175_v28 = vstv %s1535_s27  ;;  %v169_v41 = vadd.f32 %v168_v25, %v162_v24  ;;  %v629_v25 = vmul.f32 %v1462_v15, %v161_v10  ;;  %v632_v10 = vmul.f32 %v1462_v15, %v164_v59 }
  0x54   :  { %v179_v12 = vstv %s1540_s28  ;;  %s1580_s12 = sld [smem:[#allocation4 + $0x15]]  ;;  %v173_v14 = vadd.f32 %v172_v8, %v165_v60  ;;  %v176_v42 = vmul.f32 %v1445_v7, %v175_v28  ;;  %v619_v24 = vadd.f32 %v613_v62, %v151_v40 }
  0x55   :  { %v180_v18 = vmul.f32 %v1445_v7, %v179_v12  ;;  %s1586_s13 = sld [smem:[#allocation4 + $0x6]]  ;;  %v183_v45 = vstv %s1548_s0 }
  0x56   :  { %v187_v22 = vstv %s1555_s30  ;;  %s1590_s2 = sld [smem:[#allocation4 + $0x16]]  ;;  %v177_v53 = vadd.f32 %v176_v42, %v169_v41  ;;  %v184_v54 = vmul.f32 %v1472_v17, %v183_v45  ;;  %v639_v41 = vmul.f32 %v1467_v16, %v171_v4 }
  0x57   :  { %v181_v26 = vadd.f32 %v180_v18, %v173_v14  ;;  %v188_v27 = vmul.f32 %v1472_v17, %v187_v22  ;;  %s1601_s3 = sld [smem:[#allocation4 + $0x7]]  ;;  %v191_v56 = vstv %s1560_s7  ;;  %1252 = vtanh.f32 %v619_v24 }
  0x58   :  { %v195_v29 = vstv %s1049_s8  ;;  %s1604_s14 = sld [smem:[#allocation4 + $0x17]]  ;;  %v185_v6 = vadd.f32 %v184_v54, %v177_v53  ;;  %v1662_v8 = vmul.f32 %v191_v56, %v1500_v32  ;;  %v635_v56 = vmul.f32 %v1467_v16, %v167_v11 }
  0x59   :  { %v189_v33 = vadd.f32 %v188_v27, %v181_v26  ;;  %v1607_v34 = vmul.f32 %v195_v29, %v1500_v32  ;;  %s1609_s15 = sld [smem:[#allocation7 + $0x1]]  ;;  %v199_v26 = vstv %s1574_s11  ;;  %v640_v62 = vadd.f32 %v639_v41, %v632_v10 }
  0x5a   :  { %v203_v38 = vstv %s1580_s12  ;;  %s1613_s16 = sld [smem:[#allocation7 + $0x5]]  ;;  %v1714_v42 = vmul.f32 %v1524_v44, %v199_v26  ;;  %v655_v24 = vmul.f32 %v1519_v43, %v187_v22 }
  0x5b   :  { %s1620_s21 = sld [smem:[#allocation2 + $0x8]]  ;;  %v197_v46 = vadd.f32 %v1607_v34, %v189_v33  ;;  %v1625_v48 = vmul.f32 %v1524_v44, %v203_v38  ;;  %v193_v38 = vadd.f32 %v1662_v8, %v185_v6 }
  0x5c   :  { %s1627_s22 = sld [smem:[#allocation2 + $0x18]]  ;;  %v211_v49 = vstv %s1590_s2 }
  0x5d   :  { %s1632_s18 = sld [smem:[#allocation2 + $0x9]]  ;;  %v205_v57 = vadd.f32 %v1625_v48, %v197_v46  ;;  %v1645_v60 = vmul.f32 %v1545_v55, %v211_v49  ;;  %v207_v49 = vstv %s1586_s13  ;;  %v201_v6 = vadd.f32 %v1714_v42, %v193_v38 }
  0x5e   :  { %s1634_s23 = sld [smem:[#allocation2 + $0x19]]  ;;  %v219_v61 = vstv %s1604_s14 }
  0x5f   :  { %2471 = sst [smem:[#allocation13_spill]] %s1609_s15  ;;  %v213_v18 = vadd.f32 %v1645_v60, %v205_v57  ;;  %v1672_v19 = vmul.f32 %v1568_v5, %v219_v61 }
  0x60   :  { %s1640_s24 = sld [smem:[#allocation2 + $0xa]]  ;;  %v226_v46 = vstv %s1613_s16 }
  0x61   :  { %s1647_s29 = sld [smem:[#allocation2 + $0x1a]]  ;;  %v236_v58 = vstv %s1620_s21  ;;  %v221_v39 = vadd.f32 %v1672_v19, %v213_v18 }
  0x62   :  { %s1651_s1 = sld [smem:[#allocation2 + $0xb]]  ;;  %v237_v63 = vmul.f32 %v236_v58, %v1422_v0  ;;  %v239_v1 = vstv %s1627_s22 }
  0x63   :  { %s1657_s7 = sld [smem:[#allocation2 + $0x1b]]  ;;  %v240_v9 = vmul.f32 %v239_v1, %v1422_v0  ;;  %v242_v14 = vstv %s1632_s18  ;;  %v227_v57 = vadd.f32 %v226_v46, %v221_v39 }
  0x64   :  { %s1668_s8 = sld [smem:[#allocation4 + $0x8]]  ;;  %v243_v13 = vmul.f32 %v1432_v2, %v242_v14  ;;  %v246_v20 = vstv %s1634_s23 }
  0x65   :  { %s1678_s9 = sld [smem:[#allocation4 + $0x18]]  ;;  %v247_v21 = vmul.f32 %v1432_v2, %v246_v20  ;;  %1254 = vtanh.f32 %v227_v57 }
  0x66   :  { %v250_v23 = vstv %s1640_s24  ;;  %s1684_s10 = sld [smem:[#allocation4 + $0x9]]  ;;  %v244_v27 = vadd.f32 %v243_v13, %v237_v63  ;;  %v647_v63 = vmul.f32 %v1495_v31, %v179_v12  ;;  %v1249_v13 = vpop.eup %1248 }
  0x67   :  { %v251_v29 = vmul.f32 %v1445_v7, %v250_v23  ;;  %v254_v30 = vstv %s1647_s29  ;;  %s1694_s12 = sld [smem:[#allocation4 + $0x19]]  ;;  %v248_v33 = vadd.f32 %v247_v21, %v240_v9  ;;  %v1748_v9 = vmul.f32 %v1545_v55, %v207_v49 }
  0x68   :  { %v255_v35 = vmul.f32 %v1445_v7, %v254_v30  ;;  %v2415_v36 = vstv %s1651_s1  ;;  %s1700_s19 = sld [smem:[#allocation4 + $0xa]]  ;;  %v648_v39 = vadd.f32 %v647_v63, %v640_v62  ;;  %v636_v49 = vadd.f32 %v635_v56, %v629_v25 }
  0x69   :  { %v262_v40 = vstv %s1657_s7  ;;  %s1708_s11 = sld [smem:[#allocation4 + $0x1a]]  ;;  %v252_v50 = vadd.f32 %v251_v29, %v244_v27  ;;  %v259_v51 = vmul.f32 %v1472_v17, %v2415_v36  ;;  %v1251_v27 = vpop.eup %1250  ;;  %v215_v29 = vstv %s1601_s3 }
  0x6a   :  { %v256_v47 = vadd.f32 %v255_v35, %v248_v33  ;;  %v263_v59 = vmul.f32 %v1472_v17, %v262_v40  ;;  %s1720_s20 = sld [smem:[#allocation4 + $0xb]]  ;;  %v266_v53 = vstv %s1668_s8  ;;  %v209_v41 = vadd.f32 %v1748_v9, %v201_v6 }
  0x6b   :  { %v270_v52 = vstv %s1678_s9  ;;  %s1727_s26 = sld [smem:[#allocation4 + $0x1b]]  ;;  %v260_v21 = vadd.f32 %v259_v51, %v252_v50  ;;  %v1757_v26 = vmul.f32 %v266_v53, %v1500_v32  ;;  %v1784_v50 = vmul.f32 %v1568_v5, %v215_v29 }
  0x6c   :  { %v264_v4 = vadd.f32 %v263_v59, %v256_v47  ;;  %v1731_v54 = vmul.f32 %v270_v52, %v1500_v32  ;;  %s1733_s2 = sld [smem:[#allocation7 + $0x2]]  ;;  %v274_v33 = vstv %s1684_s10  ;;  %v643_v56 = vmul.f32 %v1495_v31, %v175_v28 }
  0x6d   :  { %v278_v61 = vstv %s1694_s12  ;;  %s1741_s13 = sld [smem:[#allocation7 + $0x6]]  ;;  %v268_v51 = vadd.f32 %v1757_v26, %v260_v21  ;;  %v1788_v22 = vmul.f32 %v1524_v44, %v274_v33  ;;  %v154_v57 = vmul.f32 0.5, %v1249_v13 }
  0x6e   :  { %v272_v18 = vadd.f32 %v1731_v54, %v264_v4  ;;  %v1752_v11 = vmul.f32 %v1524_v44, %v278_v61  ;;  %s1754_s25 = sld [smem:[#allocation2 + $0xc]]  ;;  %v2419_v4 = vstv %s1609_s15  ;;  %v282_v61 = vstv %s1700_s19 }
  0x6f   :  { %v286_v12 = vstv %s1708_s11  ;;  %s1760_s28 = sld [smem:[#allocation2 + $0x1c]]  ;;  %v656_v63 = vadd.f32 %v655_v24, %v648_v39  ;;  %v217_v28 = vadd.f32 %v1784_v50, %v209_v41  ;;  %v276_v13 = vadd.f32 %v1788_v22, %v268_v51 }
  0x70   :  { %v280_v35 = vadd.f32 %v1752_v11, %v272_v18  ;;  %v1766_v10 = vmul.f32 %v1545_v55, %v286_v12  ;;  %s1768_s14 = sld [smem:[#allocation2 + $0xd]]  ;;  %v157_v24 = vmul.f32 0.5, %v1251_v27  ;;  %v290_v41 = vstv %s1720_s20 }
  0x71   :  { %v294_v38 = vstv %s1727_s26  ;;  %s1771_s8 = sld [smem:[#allocation2 + $0x1d]]  ;;  %v664_v51 = vadd.f32 %v656_v63, %v1607_v34  ;;  %v224_v27 = vadd.f32 %v2419_v4, %v217_v28  ;;  %v1253_v34 = vpop.eup %1252  ;;  %v1861_v28 = vadd.f32 0.5, %v154_v57 }
  0x72   :  { %2472 = sst [smem:[#allocation14_spill]] %s1733_s2  ;;  %v288_v47 = vadd.f32 %v1766_v10, %v280_v35  ;;  %v1779_v59 = vmul.f32 %v1568_v5, %v294_v38  ;;  %v1825_v35 = vmul.f32 %v1545_v55, %v282_v61 }
  0x73   :  { %s1781_s3 = sld [smem:[#allocation2 + $0xe]]  ;;  %v2417_v52 = vstv %s1741_s13 }
  0x74   :  { %s1791_s30 = sld [smem:[#allocation2 + $0x1e]]  ;;  %v296_v53 = vadd.f32 %v1779_v59, %v288_v47  ;;  %v311_v25 = vstv %s1754_s25  ;;  %v284_v63 = vadd.f32 %v1825_v35, %v276_v13 }
  0x75   :  { %s1796_s9 = sld [smem:[#allocation2 + $0xf]]  ;;  %v314_v62 = vstv %s1760_s28  ;;  %v312_v18 = vmul.f32 %v311_v25, %v1422_v0 }
  0x76   :  { %s1803_s10 = sld [smem:[#allocation2 + $0x1f]]  ;;  %v302_v6 = vadd.f32 %v2417_v52, %v296_v53  ;;  %v315_v21 = vmul.f32 %v314_v62, %v1422_v0  ;;  %v2416_v12 = vstv %s1768_s14  ;;  %v644_v52 = vadd.f32 %v643_v56, %v636_v49  ;;  %v1255_v56 = vpop.eup %1254 }
  0x77   :  { %s1814_s27 = sld [smem:[#allocation4 + $0xc]]  ;;  %v318_v29 = vmul.f32 %v1432_v2, %v2416_v12  ;;  %v321_v33 = vstv %s1771_s8  ;;  %v672_v49 = vadd.f32 %v664_v51, %v1625_v48  ;;  %v651_v48 = vmul.f32 %v1519_v43, %v183_v45 }
  0x78   :  { %s1822_s12 = sld [smem:[#allocation4 + $0x1c]]  ;;  %1256 = vtanh.f32 %v302_v6  ;;  %v322_v38 = vmul.f32 %v1432_v2, %v321_v33 }
  0x79   :  { %v2427_v39 = vstv %s1781_s3  ;;  %s1831_s19 = sld [smem:[#allocation4 + $0xd]]  ;;  %v319_v53 = vadd.f32 %v318_v29, %v312_v18  ;;  %v1854_v18 = vmul.f32 %v1568_v5, %v290_v41  ;;  %1258 = vtanh.f32 %v224_v27 }
  0x7a   :  { %v2433_v47 = vstv %s1791_s30  ;;  %s1835_s11 = sld [smem:[#allocation4 + $0x1d]]  ;;  %v323_v61 = vadd.f32 %v322_v38, %v315_v21  ;;  %v326_v6 = vmul.f32 %v1445_v7, %v2427_v39  ;;  %v158_v38 = vadd.f32 0.5, %v157_v24 }
  0x7b   :  { %v330_v37 = vmul.f32 %v1445_v7, %v2433_v47  ;;  %s1844_s26 = sld [smem:[#allocation4 + $0xe]]  ;;  %v2425_v36 = vstv %s1796_s9  ;;  %v292_v51 = vadd.f32 %v1854_v18, %v284_v63  ;;  %v680_v45 = vadd.f32 %v672_v49, %v1645_v60 }
  0x7c   :  { %v2422_v12 = vstv %s1803_s10  ;;  %s1850_s20 = sld [smem:[#allocation4 + $0x1e]]  ;;  %v327_v13 = vadd.f32 %v326_v6, %v319_v53  ;;  %v652_v49 = vadd.f32 %v651_v48, %v644_v52  ;;  %v707_v52 = vmul.f32 %v1462_v15, %v239_v1 }
  0x7d   :  { %v331_v21 = vadd.f32 %v330_v37, %v323_v61  ;;  %v338_v29 = vmul.f32 %v1472_v17, %v2422_v12  ;;  %s1859_s15 = sld [smem:[#allocation4 + $0xf]]  ;;  %v334_v37 = vmul.f32 %v1472_v17, %v2425_v36  ;;  %v341_v57 = vstv %s1814_s27 }
  0x7e   :  { %v345_v4 = vstv %s1822_s12  ;;  %s1864_s17 = sld [smem:[#allocation4 + $0x1f]]  ;;  %v624_v12 = vmul.f32 0.5, %v1253_v34  ;;  %v1895_v34 = vmul.f32 %v341_v57, %v1500_v32 }
  0x7f   :  { %v339_v41 = vadd.f32 %v338_v29, %v331_v21  ;;  %v1871_v61 = vmul.f32 %v345_v4, %v1500_v32  ;;  %s1873_s6 = sld [smem:[#allocation7 + $0x3]]  ;;  %v232_v4 = vmul.f32 0.5, %v1255_v56  ;;  %v2426_v21 = vstv %s1733_s2 }
  0x80   :  { %v353_v24 = vstv %s1835_s11  ;;  %s1877_s12 = sld [smem:[#allocation7 + $0x7]]  ;;  %v335_v27 = vadd.f32 %v334_v37, %v327_v13  ;;  %v1904_v56 = vmul.f32 %v158_v38, %v1500_v32  ;;  %v1909_v60 = vadd.f32 0.5, %v624_v12 }
  0x81   :  { %v347_v53 = vadd.f32 %v1871_v61, %v339_v41  ;;  %v1885_v6 = vmul.f32 %v1524_v44, %v353_v24  ;;  %s1887_s5 = sld [smem:[#allocation2 + $0x20]]  ;;  %v299_v13 = vadd.f32 %v2426_v21, %v292_v51  ;;  %v349_v37 = vstv %s1831_s19 }
  0x82   :  { %v361_v29 = vstv %s1850_s20  ;;  %s1891_s27 = sld [smem:[#allocation2 + $0x21]]  ;;  %v714_v12 = vmul.f32 %v1467_v16, %v246_v20  ;;  %v343_v48 = vadd.f32 %v1895_v34, %v335_v27  ;;  %v357_v21 = vstv %s1844_s26 }
  0x83   :  { %v355_v63 = vadd.f32 %v1885_v6, %v347_v53  ;;  %v1899_v41 = vmul.f32 %v1545_v55, %v361_v29  ;;  %s1901_s0 = sld [smem:[#allocation2 + $0x22]]  ;;  %v233_v29 = vadd.f32 0.5, %v232_v4  ;;  %v688_v4 = vadd.f32 %v680_v45, %v1672_v19 }
  0x84   :  { %v369_v24 = vstv %s1864_s17  ;;  %s1907_s11 = sld [smem:[#allocation2 + $0x23]]  ;;  %v1972_v47 = vmul.f32 %v1545_v55, %v357_v21 }
  0x85   :  { %v363_v57 = vadd.f32 %v1899_v41, %v355_v63  ;;  %v1916_v53 = vmul.f32 %v1568_v5, %v369_v24  ;;  %s1918_s20 = sld [smem:[#allocation6]]  ;;  %v1257_v38 = vpop.eup %1256  ;;  %v1936_v24 = vmul.f32 %v1524_v44, %v349_v37  ;;  %v1987_v21 = vmul.f32 %v1524_v44, %v233_v29 }
  0x86   :  { %2473 = sst [smem:[#allocation15_spill]] %s1877_s12  ;;  %v2429_v36 = vstv %s1877_s12  ;;  %v307_v27 = vmul.f32 0.5, %v1257_v38  ;;  %v722_v38 = vmul.f32 %v1495_v31, %v254_v30  ;;  %v710_v30 = vmul.f32 %v1467_v16, %v242_v14 }
  0x87   :  { %s1921_s17 = sld [smem:[#allocation6 + $0x1]]  ;;  %v371_v51 = vadd.f32 %v1916_v53, %v363_v57  ;;  %v2428_v63 = vstv %s1887_s5  ;;  %v694_v14 = vadd.f32 %v688_v4, %v226_v46 }
  0x88   :  { %s1932_s19 = sld [smem:[#allocation6 + $0x2]]  ;;  %v387_v1 = vmul.f32 %v2428_v63, %v1422_v0  ;;  %v2431_v20 = vstv %s1891_s27  ;;  %v715_v63 = vadd.f32 %v714_v12, %v707_v52  ;;  %v365_v12 = vstv %s1859_s15 }
  0x89   :  { %s1943_s22 = sld [smem:[#allocation6 + $0x3]]  ;;  %v377_v57 = vadd.f32 %v2429_v36, %v371_v51  ;;  %v390_v39 = vmul.f32 %v1432_v2, %v2431_v20  ;;  %v2432_v19 = vstv %s1901_s0  ;;  %v704_v20 = vmul.f32 %v1462_v15, %v236_v58 }
  0x8a   :  { %2474 = sst [smem:[#allocation16_spill]] %s1907_s11  ;;  %v394_v45 = vmul.f32 %v1445_v7, %v2432_v19  ;;  %v2437_v37 = vstv %s1907_s11  ;;  %v351_v19 = vadd.f32 %v1936_v24, %v343_v48  ;;  %v660_v58 = vadd.f32 %v652_v49, %v1662_v8  ;;  %v1984_v48 = vpop.eup %1258 }
  0x8b   :  { %2475 = sst [smem:[#allocation17_spill]] %s1918_s20  ;;  %1260 = vtanh.f32 %v377_v57  ;;  %v391_v51 = vadd.f32 %v390_v39, %v387_v1  ;;  %v398_v36 = vmul.f32 %v1472_v17, %v2437_v37  ;;  %v2435_v52 = vstv %s1918_s20 }
  0x8c   :  { %s1951_s23 = sld [smem:[#allocation7 + $0x8]]  ;;  %v308_v39 = vadd.f32 0.5, %v307_v27  ;;  %1262 = vtanh.f32 %v299_v13  ;;  %v723_v27 = vadd.f32 %v722_v38, %v715_v63  ;;  %v402_v8 = vmul.f32 %v2435_v52, %v1904_v56 }
  0x8d   :  { %2476 = sst [smem:[#allocation18_spill]] %s1921_s17  ;;  %v395_v1 = vadd.f32 %v394_v45, %v391_v51  ;;  %v2436_v49 = vstv %s1921_s17  ;;  %v730_v13 = vmul.f32 %v1519_v43, %v262_v40  ;;  %v359_v29 = vadd.f32 %v1972_v47, %v351_v19 }
  0x8e   :  { %2477 = sst [smem:[#allocation19_spill]] %s1932_s19  ;;  %v2004_v46 = vmul.f32 %v1568_v5, %v365_v12  ;;  %v2010_v4 = vmul.f32 %v1545_v55, %v308_v39  ;;  %v718_v19 = vmul.f32 %v1495_v31, %v250_v23  ;;  %v406_v38 = vmul.f32 %v2436_v49, %v1987_v21 }
  0x8f   :  { %s1957_s26 = sld [smem:[#allocation2 + $0x24]]  ;;  %v399_v57 = vadd.f32 %v398_v36, %v395_v1  ;;  %v711_v36 = vadd.f32 %v710_v30, %v704_v20  ;;  %v731_v30 = vadd.f32 %v730_v13, %v723_v27  ;;  %v2449_v12 = vstv %s1932_s19 }
  0x90   :  { %s1965_s2 = sld [smem:[#allocation2 + $0x25]]  ;;  %v2049_v13 = vadd.f32 %v660_v58, %v1714_v42  ;;  %1264 = vtanh.f32 %v694_v14  ;;  %v410_v42 = vmul.f32 %v2449_v12, %v2010_v4  ;;  %v2458_v14 = vstv %s1943_s22 }
  0x91   :  { %s1975_s29 = sld [smem:[#allocation2 + $0x26]]  ;;  %v403_v39 = vadd.f32 %v402_v8, %v399_v57  ;;  %v739_v27 = vadd.f32 %v731_v30, %v1731_v54  ;;  %v373_v57 = vstv %s1873_s6  ;;  %v2059_v30 = vadd.f32 %v2004_v46, %v359_v29 }
  0x92   :  { %s1981_s21 = sld [smem:[#allocation2 + $0x27]] }
  0x93   :  { %s1989_s18 = sld [smem:[#allocation6 + $0x4]]  ;;  %v747_v54 = vadd.f32 %v739_v27, %v1752_v11 }
  0x94   :  { %s1997_s15 = sld [smem:[#allocation6 + $0x5]] }
  0x95   :  { %v425_v63 = vstv %s1957_s26  ;;  %s2007_s16 = sld [smem:[#allocation6 + $0x6]] }
  0x96   :  { %v426_v45 = vmul.f32 %v425_v63, %v1422_v0  ;;  %v428_v40 = vstv %s1965_s2  ;;  %s2016_s7 = sld [smem:[#allocation6 + $0x7]] }
  0x97   :  { %v429_v20 = vmul.f32 %v1432_v2, %v428_v40  ;;  %v2442_v51 = vstv %s1975_s29  ;;  %s2028_s20 = sld [smem:[#allocation7 + $0x9]] }
  0x98   :  { %2478 = sst [smem:[#allocation20_spill]] %s1981_s21  ;;  %v433_v1 = vmul.f32 %v1445_v7, %v2442_v51  ;;  %v2440_v23 = vstv %s1981_s21  ;;  %v407_v51 = vadd.f32 %v406_v38, %v403_v39  ;;  %v1261_v58 = vpop.eup %1260 }
  0x99   :  { %2479 = sst [smem:[#allocation21_spill]] %s1989_s18  ;;  %v430_v52 = vadd.f32 %v429_v20, %v426_v45  ;;  %v437_v49 = vmul.f32 %v1472_v17, %v2440_v23  ;;  %v2444_v37 = vstv %s1989_s18  ;;  %v382_v29 = vmul.f32 0.5, %v1261_v58  ;;  %v2091_v58 = vpop.eup %1262 }
  0x9a   :  { %2480 = sst [smem:[#allocation22_spill]] %s1997_s15  ;;  %v2450_v8 = vstv %s1997_s15  ;;  %v441_v20 = vmul.f32 %v2444_v37, %v1904_v56  ;;  %v411_v12 = vadd.f32 %v410_v42, %v407_v51 }
  0x9b   :  { %2481 = sst [smem:[#allocation23_spill]] %s2007_s16  ;;  %v434_v45 = vadd.f32 %v433_v1, %v430_v52  ;;  %v2448_v23 = vstv %s2007_s16  ;;  %v2066_v52 = vadd.f32 %v718_v19, %v711_v36  ;;  %v2466_v1 = vstv %s1951_s23 }
  0x9c   :  { %2482 = sst [smem:[#allocation24_spill]] %s2016_s7  ;;  %v445_v11 = vmul.f32 %v2450_v8, %v1987_v21  ;;  %v449_v38 = vmul.f32 %v2448_v23, %v2010_v4  ;;  %v383_v23 = vadd.f32 0.5, %v382_v29 }
  0x9d   :  { %s2035_s24 = sld [smem:[#allocation2 + $0x28]]  ;;  %v438_v37 = vadd.f32 %v437_v49, %v434_v45  ;;  %v782_v49 = vmul.f32 %v1462_v15, %v314_v62  ;;  %v755_v45 = vadd.f32 %v747_v54, %v1766_v10 }
  0x9e   :  { %s2041_s17 = sld [smem:[#allocation2 + $0x29]]  ;;  %v2107_v51 = vmul.f32 %v1568_v5, %v383_v23  ;;  %v789_v5 = vmul.f32 %v1467_v16, %v321_v33 }
  0x9f   :  { %s2046_s11 = sld [smem:[#allocation2 + $0x2a]]  ;;  %v442_v36 = vadd.f32 %v441_v20, %v438_v37  ;;  %v2457_v20 = vstv %s2016_s7 }
  0xa0   :  { %s2055_s21 = sld [smem:[#allocation2 + $0x2b]]  ;;  %v414_v23 = vmul.f32 %v2458_v14, %v2107_v51 }
  0xa1   :  { %s2064_s12 = sld [smem:[#allocation6 + $0x8]]  ;;  %v446_v37 = vadd.f32 %v445_v11, %v442_v36 }
  0xa2   :  { %s2073_s18 = sld [smem:[#allocation6 + $0x9]] }
  0xa3   :  { %v2451_v39 = vstv %s2035_s24  ;;  %s2079_s19 = sld [smem:[#allocation6 + $0xa]]  ;;  %v450_v29 = vadd.f32 %v449_v38, %v446_v37  ;;  %v2465_v37 = vstv %s2028_s20 }
  0xa4   :  { %2483 = sst [smem:[#allocation25_spill]] %s2041_s17  ;;  %v466_v19 = vmul.f32 %v2451_v39, %v1422_v0  ;;  %v2464_v27 = vstv %s2041_s17 }
  0xa5   :  { %2484 = sst [smem:[#allocation26_spill]] %s2046_s11  ;;  %v469_v8 = vmul.f32 %v1432_v2, %v2464_v27  ;;  %v2455_v62 = vstv %s2046_s11 }
  0xa6   :  { %2485 = sst [smem:[#allocation27_spill]] %s2055_s21  ;;  %v473_v39 = vmul.f32 %v1445_v7, %v2455_v62  ;;  %v2462_v10 = vstv %s2055_s21  ;;  %v763_v62 = vadd.f32 %v755_v45, %v1779_v59  ;;  %v779_v45 = vmul.f32 %v1462_v15, %v311_v25 }
  0xa7   :  { %s2088_s15 = sld [smem:[#allocation6 + $0xb]]  ;;  %v470_v54 = vadd.f32 %v469_v8, %v466_v19  ;;  %v477_v42 = vmul.f32 %v1472_v17, %v2462_v10  ;;  %v2460_v11 = vstv %s2064_s12  ;;  %v453_v8 = vmul.f32 %v2457_v20, %v2107_v51 }
  0xa8   :  { %s2097_s28 = sld [smem:[#allocation7 + $0xa]]  ;;  %v2461_v36 = vstv %s2073_s18  ;;  %v481_v38 = vmul.f32 %v2460_v11, %v1904_v56  ;;  %v1265_v11 = vpop.eup %1264  ;;  %v2486_v15 = vstv %s1741_s13 }
  0xa9   :  { %s2104_s16 = sld [smem:[#allocation2 + $0x2c]]  ;;  %v474_v19 = vadd.f32 %v473_v39, %v470_v54  ;;  %v485_v59 = vmul.f32 %v2461_v36, %v1987_v21  ;;  %v2463_v33 = vstv %s2079_s19  ;;  %v415_v39 = vadd.f32 %v414_v23, %v411_v12 }
  0xaa   :  { %s2113_s17 = sld [smem:[#allocation2 + $0x2d]]  ;;  %v454_v54 = vadd.f32 %v453_v8, %v450_v29  ;;  %v489_v36 = vmul.f32 %v2463_v33, %v2010_v4  ;;  %v769_v25 = vadd.f32 %v763_v62, %v2486_v15  ;;  %v790_v12 = vadd.f32 %v789_v5, %v782_v49 }
  0xab   :  { %s2116_s11 = sld [smem:[#allocation2 + $0x2e]]  ;;  %v478_v20 = vadd.f32 %v477_v42, %v474_v19  ;;  %v418_v42 = vadd.f32 %v2466_v1, %v415_v39  ;;  %v2487_v49 = vstv %s1791_s30 }
  0xac   :  { %s2131_s21 = sld [smem:[#allocation2 + $0x2f]]  ;;  %v457_v29 = vadd.f32 %v2465_v37, %v454_v54  ;;  %v797_v62 = vmul.f32 %v1495_v31, %v2487_v49  ;;  %v2488_v54 = vstv %s1768_s14 }
  0xad   :  { %s2138_s8 = sld [smem:[#allocation6 + $0xc]]  ;;  %v492_v14 = vstv %s2088_s15  ;;  %v482_v23 = vadd.f32 %v481_v38, %v478_v20  ;;  %1266 = vtanh.f32 %v418_v42  ;;  %v785_v15 = vmul.f32 %v1467_v16, %v2488_v54 }
  0xae   :  { %s2144_s7 = sld [smem:[#allocation6 + $0xd]]  ;;  %v493_v19 = vmul.f32 %v492_v14, %v2107_v51  ;;  %1268 = vtanh.f32 %v457_v29  ;;  %v229_v54 = vmul.f32 0.5, %v1984_v48 }
  0xaf   :  { %v505_v10 = vstv %s2104_s16  ;;  %s2150_s25 = sld [smem:[#allocation6 + $0xe]]  ;;  %v486_v5 = vadd.f32 %v485_v59, %v482_v23  ;;  %1270 = vtanh.f32 %v769_v25  ;;  %v496_v59 = vstv %s2097_s28 }
  0xb0   :  { %v506_v8 = vmul.f32 %v505_v10, %v1422_v0  ;;  %v508_v33 = vstv %s2113_s17  ;;  %s2166_s13 = sld [smem:[#allocation6 + $0xf]]  ;;  %v798_v23 = vadd.f32 %v797_v62, %v790_v12  ;;  %v2491_v25 = vstv %s1781_s3 }
  0xb1   :  { %v512_v27 = vstv %s2116_s11  ;;  %v509_v20 = vmul.f32 %v1432_v2, %v508_v33  ;;  %v490_v37 = vadd.f32 %v489_v36, %v486_v5  ;;  %v2489_v36 = vstv %s1651_s1  ;;  %s2197_s14 = sld [smem:[#allocation7 + $0xb]] }
  0xb2   :  { %v513_v0 = vmul.f32 %v1445_v7, %v512_v27  ;;  %v516_v38 = vstv %s2131_s21  ;;  %v374_v7 = vadd.f32 %v373_v57, %v2059_v30  ;;  %v793_v30 = vmul.f32 %v1495_v31, %v2491_v25  ;;  %s2500_s26 = sld [smem:[#allocation20_spill]] }
  0xb3   :  { %v520_v39 = vstv %s2138_s8  ;;  %v510_v42 = vadd.f32 %v509_v20, %v506_v8  ;;  %v517_v2 = vmul.f32 %v1472_v17, %v516_v38  ;;  %v494_v49 = vadd.f32 %v493_v19, %v490_v37  ;;  %s2502_s3 = sld [smem:[#allocation29_spill]] }
  0xb4   :  { %v524_v29 = vstv %s2144_s7  ;;  %v521_v16 = vmul.f32 %v520_v39, %v1904_v56  ;;  %v726_v8 = vmul.f32 %v1519_v43, %v2489_v36  ;;  %v786_v17 = vadd.f32 %v785_v15, %v779_v45  ;;  %s2503_s30 = sld [smem:[#allocation25_spill]] }
  0xb5   :  { %v514_v1 = vadd.f32 %v513_v0, %v510_v42  ;;  %v528_v5 = vstv %s2150_s25  ;;  %v2492_v20 = vstv %s1803_s10  ;;  %v497_v37 = vadd.f32 %v496_v59, %v494_v49  ;;  %v1296_v49 = vld [vmem:[%s2411_s4 + $0x8] sm:$0x3]  ;;  %s2507_s10 = sld [smem:[#allocation27_spill]] }
  0xb6   :  { %v805_v12 = vmul.f32 %v1519_v43, %v2492_v20  ;;  %v525_v56 = vmul.f32 %v524_v29, %v1987_v21  ;;  %v2212_v62 = vmul.f32 %v1909_v60, %v1500_v32  ;;  %1272 = vtanh.f32 %v374_v7  ;;  %s2520_s11 = sld [smem:[#allocation12_spill]] }
  0xb7   :  { %2490 = sst [smem:[#allocation28_spill]] %s2197_s14  ;;  %v518_v19 = vadd.f32 %v517_v2, %v514_v1  ;;  %v532_v45 = vstv %s2166_s13  ;;  %v676_v31 = vadd.f32 %v2049_v13, %v1748_v9  ;;  %1274 = vtanh.f32 %v497_v37 }
  0xb8   :  { %v806_v0 = vadd.f32 %v805_v12, %v798_v23  ;;  %v529_v21 = vmul.f32 %v528_v5, %v2010_v4  ;;  %v727_v15 = vadd.f32 %v726_v8, %v2066_v52  ;;  %v794_v60 = vadd.f32 %v793_v30, %v786_v17  ;;  %s2529_s8 = sld [smem:[#allocation14_spill]] }
  0xb9   :  { %v522_v1 = vadd.f32 %v521_v16, %v518_v19  ;;  %v2493_v42 = vstv %s1796_s9  ;;  %v304_v13 = vmul.f32 0.5, %v2091_v58  ;;  %v533_v7 = vmul.f32 %v532_v45, %v2107_v51  ;;  %s2505_s9 = sld [smem:[#allocation26_spill]] }
  0xba   :  { %v801_v2 = vmul.f32 %v1519_v43, %v2493_v42  ;;  %v814_v9 = vadd.f32 %v806_v0, %v1871_v61  ;;  %v699_v23 = vmul.f32 0.5, %v1265_v11  ;;  %v2231_v4 = vadd.f32 %v676_v31, %v1784_v50  ;;  %v1297_v61 = vld [vmem:[%s2411_s4 + $0xa] sm:$0x3]  ;;  %s2533_s2 = sld [smem:[#allocation24_spill]] }
  0xbb   :  { %v526_v48 = vadd.f32 %v525_v56, %v522_v1  ;;  %v2494_v43 = vstv %s1887_s5  ;;  %v2495_v58 = vstv %s1891_s27  ;;  %v230_v8 = vadd.f32 0.5, %v229_v54  ;;  %s2496_s5 = sld [smem:[#allocation15_spill]] }
  0xbc   :  { %v822_v52 = vadd.f32 %v814_v9, %v1885_v6  ;;  %v854_v16 = vmul.f32 %v1296_v49, %v2494_v43  ;;  %v857_v36 = vmul.f32 %v1297_v61, %v2495_v58  ;;  %v894_v11 = vmul.f32 %v1296_v49, %v425_v63  ;;  %v1267_v6 = vpop.eup %1266  ;;  %s2498_s27 = sld [smem:[#allocation16_spill]]  ;;  %v1300_v43 = vld [vmem:[%s2411_s4 + $0xe] sm:$0x3] }
  0xbd   :  { %v530_v51 = vadd.f32 %v529_v21, %v526_v48  ;;  %v897_v50 = vmul.f32 %v1297_v61, %v428_v40  ;;  %v536_v17 = vstv %s2197_s14  ;;  %v735_v25 = vadd.f32 %v727_v15, %v1757_v26  ;;  %v1269_v12 = vpop.eup %1268  ;;  %v1298_v26 = vld [vmem:[%s2411_s4 + $0xc] sm:$0x3]  ;;  %s2508_s14 = sld [smem:[#allocation30_spill]] }
  0xbe   :  { %v802_v30 = vadd.f32 %v801_v2, %v794_v60  ;;  %v830_v20 = vadd.f32 %v822_v52, %v1899_v41  ;;  %v305_v37 = vadd.f32 0.5, %v304_v13  ;;  %v420_v19 = vsub.f32 %v1267_v6, %v1500_v32  ;;  %v1271_v63 = vpop.eup %1270 }
  0xbf   :  { %v534_v56 = vadd.f32 %v533_v7, %v530_v51  ;;  %v700_v31 = vadd.f32 0.5, %v699_v23  ;;  %v459_v40 = vsub.f32 %v1269_v12, %v1524_v44  ;;  %v858_v54 = vadd.f32 %v857_v36, %v854_v16 }
  0xc0   :  { %v838_v0 = vadd.f32 %v830_v20, %v1916_v53  ;;  %v2497_v1 = vstv %s1901_s0  ;;  %v421_v41 = vmul.f32 %v420_v19, %v1861_v28  ;;  %v898_v32 = vadd.f32 %v897_v50, %v894_v11  ;;  %v2271_v28 = vld [vmem:[%s2502_s3] sm:$0x3] }
  0xc1   :  { %v861_v21 = vmul.f32 %v1298_v26, %v2497_v1  ;;  %v537_v15 = vadd.f32 %v536_v17, %v534_v56  ;;  %v2499_v60 = vstv %s1975_s29  ;;  %v460_v2 = vmul.f32 %v459_v40, %v230_v8  ;;  %s2504_s29 = sld [smem:[#allocation17_spill]] }
  0xc2   :  { %v901_v42 = vmul.f32 %v1298_v26, %v2499_v60  ;;  %v743_v9 = vadd.f32 %v735_v25, %v1788_v22  ;;  %v810_v53 = vadd.f32 %v802_v30, %v1895_v34  ;;  %v2501_v13 = vstv %s2496_s5  ;;  %s2512_s5 = sld [smem:[#allocation21_spill]] }
  0xc3   :  { %v844_v48 = vadd.f32 %v838_v0, %v2501_v13  ;;  %v422_v7 = vadd.f32 %v2271_v28, %v421_v41  ;;  %1276 = vtanh.f32 %v537_v15  ;;  %v701_v23 = vmul.f32 %v1524_v44, %v700_v31  ;;  %v1273_v36 = vpop.eup %1272 }
  0xc4   :  { %v774_v52 = vmul.f32 0.5, %v1271_v63  ;;  %v461_v22 = vadd.f32 %v1524_v44, %v460_v2  ;;  %v862_v34 = vadd.f32 %v861_v21, %v858_v54  ;;  %v2506_v16 = vstv %s2498_s27  ;;  %v1275_v30 = vpop.eup %1274 }
  0xc5   :  { %1278 = vtanh.f32 %v844_v48  ;;  %v865_v58 = vmul.f32 %v1300_v43, %v2506_v16  ;;  %423 = vst [vmem:[%s2508_s14] sm:$0x3] %v422_v7  ;;  %v902_v8 = vadd.f32 %v901_v42, %v898_v32  ;;  %v2509_v51 = vstv %s2500_s26  ;;  %s2518_s26 = sld [smem:[#allocation22_spill]] }
  0xc6   :  { %v905_v44 = vmul.f32 %v1300_v43, %v2509_v51  ;;  %v2510_v11 = vstv %s2035_s24  ;;  %v2511_v6 = vstv %s2503_s30  ;;  %1111 = vst [vmem:[%s2508_s14 + $0x2] sm:$0x3] %v461_v22  ;;  %v751_v20 = vadd.f32 %v743_v9, %v1825_v35  ;;  %s2516_s24 = sld [smem:[#allocation18_spill]] }
  0xc7   :  { %v934_v50 = vmul.f32 %v1296_v49, %v2510_v11  ;;  %v937_v25 = vmul.f32 %v1297_v61, %v2511_v6  ;;  %v818_v12 = vadd.f32 %v810_v53, %v1936_v24  ;;  %v2513_v19 = vstv %s2504_s29  ;;  %s2522_s30 = sld [smem:[#allocation13_spill]] }
  0xc8   :  { %v869_v56 = vmul.f32 %v2212_v62, %v2513_v19  ;;  %v2514_v31 = vstv %s2505_s9  ;;  %v499_v40 = vsub.f32 %v1275_v30, %v1545_v55  ;;  %v775_v0 = vadd.f32 0.5, %v774_v52  ;;  %s2526_s9 = sld [smem:[#allocation23_spill]] }
  0xc9   :  { %v941_v63 = vmul.f32 %v1298_v26, %v2514_v31  ;;  %v938_v54 = vadd.f32 %v937_v25, %v934_v50  ;;  %v2515_v1 = vstv %s2507_s10  ;;  %v866_v41 = vadd.f32 %v865_v58, %v862_v34 }
  0xca   :  { %v945_v21 = vmul.f32 %v1300_v43, %v2515_v1  ;;  %v974_v15 = vmul.f32 %v1296_v49, %v505_v10  ;;  %v977_v35 = vmul.f32 %v1297_v61, %v508_v33  ;;  %v981_v24 = vmul.f32 %v1298_v26, %v512_v27  ;;  %v2320_v27 = vld [vmem:[%s2502_s3 + $0x4] sm:$0x3] }
  0xcb   :  { %v500_v32 = vmul.f32 %v499_v40, %v305_v37  ;;  %v906_v60 = vadd.f32 %v905_v44, %v902_v8  ;;  %v2517_v42 = vstv %s2512_s5  ;;  %v942_v9 = vadd.f32 %v941_v63, %v938_v54 }
  0xcc   :  { %v909_v2 = vmul.f32 %v2212_v62, %v2517_v42  ;;  %v379_v55 = vmul.f32 0.5, %v1273_v36  ;;  %v2519_v53 = vstv %s2064_s12  ;;  %v978_v48 = vadd.f32 %v977_v35, %v974_v15  ;;  %s2523_s12 = sld [smem:[#allocation19_spill]] }
  0xcd   :  { %v949_v13 = vmul.f32 %v2212_v62, %v2519_v53  ;;  %v985_v10 = vmul.f32 %v1300_v43, %v516_v38  ;;  %v501_v33 = vadd.f32 %v2320_v27, %v500_v32  ;;  %v826_v49 = vadd.f32 %v818_v12, %v1972_v47 }
  0xce   :  { %v2521_v61 = vstv %s2516_s24  ;;  %v946_v26 = vadd.f32 %v945_v21, %v942_v9  ;;  %v776_v7 = vmul.f32 %v2320_v27, %v775_v0  ;;  %v870_v52 = vadd.f32 %v869_v56, %v866_v41 }
  0xcf   :  { %v873_v37 = vmul.f32 %v701_v23, %v2521_v61  ;;  %v982_v22 = vadd.f32 %v981_v24, %v978_v48  ;;  %v989_v38 = vmul.f32 %v2212_v62, %v520_v39  ;;  %1121 = vst [vmem:[%s2508_s14 + $0x4] sm:$0x3] %v501_v33  ;;  %v910_v34 = vadd.f32 %v909_v2, %v906_v60 }
  0xd0   :  { %v2524_v43 = vstv %s2518_s26  ;;  %v950_v47 = vadd.f32 %v949_v13, %v946_v26  ;;  %v2525_v58 = vstv %s2073_s18  ;;  %v993_v51 = vmul.f32 %v701_v23, %v524_v29  ;;  %v1277_v25 = vpop.eup %1276 }
  0xd1   :  { %v913_v16 = vmul.f32 %v701_v23, %v2524_v43  ;;  %v953_v36 = vmul.f32 %v701_v23, %v2525_v58  ;;  %v986_v8 = vadd.f32 %v985_v10, %v982_v22  ;;  %v380_v44 = vadd.f32 0.5, %v379_v55 }
  0xd2   :  { %v2527_v11 = vstv %s2520_s11  ;;  %v2528_v39 = vstv %s2522_s30  ;;  %v759_v6 = vadd.f32 %v751_v20, %v1854_v18  ;;  %v834_v30 = vadd.f32 %v826_v49, %v2004_v46  ;;  %v1279_v63 = vpop.eup %1278 }
  0xd3   :  { %v616_v50 = vadd.f32 %v1659_v3, %v2527_v11  ;;  %v691_v62 = vadd.f32 %v2231_v4, %v2528_v39  ;;  %v874_v12 = vadd.f32 %v873_v37, %v870_v52  ;;  %v2530_v19 = vstv %s2523_s12  ;;  %v2352_v3 = vld [vmem:[%s2502_s3 + $0x6] sm:$0x3] }
  0xd4   :  { %v877_v56 = vmul.f32 %v776_v7, %v2530_v19  ;;  %v990_v31 = vadd.f32 %v989_v38, %v986_v8  ;;  %v539_v29 = vsub.f32 %v1277_v25, %v2352_v3  ;;  %v914_v4 = vadd.f32 %v913_v16, %v910_v34 }
  0xd5   :  { %v2531_v23 = vstv %s2526_s9  ;;  %v2532_v20 = vstv %s2079_s19  ;;  %v849_v0 = vmul.f32 0.5, %v1279_v63  ;;  %v954_v46 = vadd.f32 %v953_v36, %v950_v47 }
  0xd6   :  { %v917_v18 = vmul.f32 %v776_v7, %v2531_v23  ;;  %v957_v40 = vmul.f32 %v776_v7, %v2532_v20  ;;  %v994_v54 = vadd.f32 %v993_v51, %v990_v31  ;;  %v997_v1 = vmul.f32 %v776_v7, %v528_v5 }
  0xd7   :  { %v540_v21 = vmul.f32 %v539_v29, %v380_v44  ;;  %v2534_v41 = vstv %s2529_s8  ;;  %1280 = vtanh.f32 %v616_v50  ;;  %v850_v35 = vadd.f32 0.5, %v849_v0 }
  0xd8   :  { %v766_v15 = vadd.f32 %v759_v6, %v2534_v41  ;;  %1282 = vtanh.f32 %v691_v62  ;;  %v841_v32 = vadd.f32 %v834_v30, %v373_v57  ;;  %v878_v60 = vadd.f32 %v877_v56, %v874_v12  ;;  %v1303_v6 = vld [vmem:[%s2502_s3 + $0x2] sm:$0x3] }
  0xd9   :  { %v541_v24 = vadd.f32 %v2352_v3, %v540_v21  ;;  %v851_v42 = vmul.f32 %v2352_v3, %v850_v35  ;;  %v918_v2 = vadd.f32 %v917_v18, %v914_v4  ;;  %v958_v5 = vadd.f32 %v957_v40, %v954_v46 }
  0xda   :  { %v998_v9 = vadd.f32 %v997_v1, %v994_v54  ;;  %1284 = vtanh.f32 %v766_v15  ;;  %v2536_v55 = vstv %s1943_s22  ;;  %v2537_v13 = vstv %s2533_s2 }
  0xdb   :  { %1131 = vst [vmem:[%s2508_s14 + $0x6] sm:$0x3] %v541_v24  ;;  %v881_v53 = vmul.f32 %v851_v42, %v2536_v55  ;;  %v921_v48 = vmul.f32 %v851_v42, %v2537_v13  ;;  %v961_v57 = vmul.f32 %v851_v42, %v492_v14  ;;  %v1001_v10 = vmul.f32 %v851_v42, %v532_v45 }
  0xdc   :  { %1286 = vtanh.f32 %v841_v32  ;;  %v2538_v26 = vstv %s1951_s23  ;;  %v2539_v52 = vstv %s2028_s20 }
  0xdd   :  { %v882_v33 = vadd.f32 %v881_v53, %v878_v60  ;;  %v922_v49 = vadd.f32 %v921_v48, %v918_v2  ;;  %v962_v61 = vadd.f32 %v961_v57, %v958_v5  ;;  %v1002_v37 = vadd.f32 %v1001_v10, %v998_v9 }
  0xdf   :  { %v885_v7 = vadd.f32 %v882_v33, %v2538_v26  ;;  %v925_v22 = vadd.f32 %v922_v49, %v2539_v52  ;;  %v965_v38 = vadd.f32 %v962_v61, %v496_v59  ;;  %v1005_v34 = vadd.f32 %v1002_v37, %v536_v17 }
  0xe1   :  { %1288 = vtanh.f32 %v885_v7 }
  0xe2   :  { %1290 = vtanh.f32 %v925_v22 }
  0xe3   :  { %1292 = vtanh.f32 %v965_v38 }
  0xe4   :  { %v1281_v43 = vpop.eup %1280  ;;  %1294 = vtanh.f32 %v1005_v34 }
  0xe5   :  { %v1283_v14 = vpop.eup %1282  ;;  %v621_v47 = vmul.f32 0.5, %v1281_v43 }
  0xe6   :  { %v696_v58 = vmul.f32 0.5, %v1283_v14 }
  0xe7   :  { %v1285_v45 = vpop.eup %1284  ;;  %v622_v51 = vadd.f32 0.5, %v621_v47 }
  0xe8   :  { %v771_v36 = vmul.f32 0.5, %v1285_v45  ;;  %v697_v11 = vadd.f32 0.5, %v696_v58 }
  0xe9   :  { %v1287_v16 = vpop.eup %1286 }
  0xea   :  { %v846_v8 = vmul.f32 0.5, %v1287_v16  ;;  %v772_v39 = vadd.f32 0.5, %v771_v36 }
  0xec   :  { %v847_v62 = vadd.f32 0.5, %v846_v8 }
  0xee   :  { %v1289_v44 = vpop.eup %1288 }
  0xef   :  { %v1291_v50 = vpop.eup %1290  ;;  %v887_v59 = vsub.f32 %v1289_v44, %v2271_v28 }
  0xf0   :  { %v1293_v17 = vpop.eup %1292  ;;  %v927_v25 = vsub.f32 %v1291_v50, %v1303_v6 }
  0xf1   :  { %v1295_v30 = vpop.eup %1294  ;;  %v888_v12 = vmul.f32 %v887_v59, %v622_v51  ;;  %v967_v19 = vsub.f32 %v1293_v17, %v2320_v27 }
  0xf2   :  { %v928_v56 = vmul.f32 %v927_v25, %v697_v11  ;;  %v1007_v31 = vsub.f32 %v1295_v30, %v2352_v3 }
  0xf3   :  { %v889_v63 = vadd.f32 %v2271_v28, %v888_v12  ;;  %v968_v29 = vmul.f32 %v967_v19, %v772_v39 }
  0xf4   :  { %v929_v4 = vadd.f32 %v1303_v6, %v928_v56  ;;  %v1008_v23 = vmul.f32 %v1007_v31, %v847_v62 }
  0xf5   :  { %1213 = vst [vmem:[%s2508_s14 + $0x8] sm:$0x3] %v889_v63  ;;  %v969_v18 = vadd.f32 %v2320_v27, %v968_v29 }
  0xf6   :  { %1223 = vst [vmem:[%s2508_s14 + $0xa] sm:$0x3] %v929_v4  ;;  %v1009_v20 = vadd.f32 %v2352_v3, %v1008_v23 }
  0xf7   :  { %1233 = vst [vmem:[%s2508_s14 + $0xc] sm:$0x3] %v969_v18 }
  0xf8   :  { %1243 = vst [vmem:[%s2508_s14 + $0xe] sm:$0x3] %v1009_v20 }
  0xf9   :  { %1016 = vsyncpa [#allocation3], 1 }
  0xfa   :  { %1017 = vsyncpa [#allocation5], 1 }
  0xfb   :  { %1018 = vsyncpa [#allocation8], 1 }

</bundles_post_ra>
